<compile_context>
chip_gen: v7x
topology: tpu7x:2x2x1
jax: 0.10.0
libtpu: 0.0.40
codegen_flags: <defaults>
</compile_context>

<pallas_src>
import math
from functools import partial

import jax
import jax.numpy as jnp
from jax.experimental import pallas as pl
from jax.experimental.pallas import tpu as pltpu


def encoder_layer_kernel(x_ref,
                         wq_ref, bq_ref, wk_ref, bk_ref, wv_ref, bv_ref,
                         wo_ref, bo_ref, g1_ref, be1_ref,
                         w1_ref, b1_ref, w2_ref, b2_ref, g2_ref, be2_ref,
                         out_ref, attn_ref,
                         *, heads, dim_key, dim_value, tq, eps, compute_dtype):
    del dim_value  # shapes carry it
    qi = pl.program_id(1)
    L = x_ref.shape[1]
    D = x_ref.shape[2]
    cdt = compute_dtype

    x = x_ref[0]                                        # (L, D) fp32, full sequence
    q_start = pl.multiple_of(qi * tq, tq)
    xq = x_ref[0, pl.ds(q_start, tq), :]                # (TQ, D) query-tile rows

    # Broadcast activations across the head (leading, un-tiled) axis so every
    # projection / attention matmul is a single batched einsum — no lane slicing.
    xk_b = jnp.broadcast_to(x.astype(cdt)[None], (heads, L, D))      # (H, L, D)
    xq_b = jnp.broadcast_to(xq.astype(cdt)[None], (heads, tq, D))    # (H, TQ, D)

    # --- head-major QKV projections (fp32 accumulation) ----------------------
    q = jnp.einsum('hqd,hdk->hqk', xq_b, wq_ref[...].astype(cdt),
                   preferred_element_type=jnp.float32) + bq_ref[...]   # (H,TQ,dk)
    k = jnp.einsum('hld,hdk->hlk', xk_b, wk_ref[...].astype(cdt),
                   preferred_element_type=jnp.float32) + bk_ref[...]   # (H,L,dk)
    v = jnp.einsum('hld,hdk->hlk', xk_b, wv_ref[...].astype(cdt),
                   preferred_element_type=jnp.float32) + bv_ref[...]   # (H,L,dv)

    # --- scaled dot-product attention (batched over heads) -------------------
    q = q * (1.0 / math.sqrt(dim_key))
    s = jnp.einsum('hqk,hlk->hql', q.astype(cdt), k.astype(cdt),
                   preferred_element_type=jnp.float32)                 # (H,TQ,L)
    # TODO(synk): optional self_attention_mask (mask=None default path only)
    s = s - jnp.max(s, axis=-1, keepdims=True)
    p = jnp.exp(s)                                                      # fp32 EUP
    p = p * pl.reciprocal(jnp.sum(p, axis=-1, keepdims=True), approx=True)
    attn_ref[0] = p                                                     # (H,TQ,L)

    ctx = jnp.einsum('hql,hlk->hqk', p.astype(cdt), v.astype(cdt),
                     preferred_element_type=jnp.float32)                # (H,TQ,dv)

    # --- output projection: per-head matmul + sum over the head axis ---------
    o_h = jnp.einsum('hqk,hkd->hqd', ctx.astype(cdt), wo_ref[...].astype(cdt),
                     preferred_element_type=jnp.float32)                # (H,TQ,D)
    attn_out = jnp.sum(o_h, axis=0) + bo_ref[...]                       # (TQ,D)

    # --- residual + LayerNorm 1 (fp32 VPU math) -------------------------------
    y = attn_out + xq
    mu = jnp.mean(y, axis=-1, keepdims=True)
    var = jnp.mean((y - mu) ** 2, axis=-1, keepdims=True)
    y = (y - mu) * jax.lax.rsqrt(var + eps) * g1_ref[...] + be1_ref[...]

    # --- position-wise feed forward (per Q-tile, bounded scratch) -------------
    h1 = jnp.dot(y.astype(cdt), w1_ref[...].astype(cdt),
                 preferred_element_type=jnp.float32) + b1_ref[...]
    h1 = jnp.maximum(h1, 0.0)                                           # ReLU
    h2 = jnp.dot(h1.astype(cdt), w2_ref[...].astype(cdt),
                 preferred_element_type=jnp.float32) + b2_ref[...]

    # --- residual + LayerNorm 2 ------------------------------------------------
    z = h2 + y
    mu2 = jnp.mean(z, axis=-1, keepdims=True)
    var2 = jnp.mean((z - mu2) ** 2, axis=-1, keepdims=True)
    out_ref[0] = ((z - mu2) * jax.lax.rsqrt(var2 + eps) * g2_ref[...]
                  + be2_ref[...]).astype(out_ref.dtype)


def encoder_layer(x, params, *, heads, dim_key, dim_value,
                  tile_q=128, compute_dtype=jnp.float32, eps=1e-5):
    (wq, bq, wk, bk, wv, bv, wo, bo, g1, be1,
     w1, b1, w2, b2, g2, be2) = params
    B, L, D = x.shape
    Di = w1.shape[1]

    tq = min(tile_q, L)
    assert L % tq == 0, "sequence length must be divisible by the Q tile"
    nq = L // tq

    # Re-pack projection weights head-major in the wrapper (layout plumbing so
    # the kernel never slices or concatenates along the lane axis).
    wq_h = wq.reshape(D, heads, dim_key).transpose(1, 0, 2)       # (H, D, dk)
    wk_h = wk.reshape(D, heads, dim_key).transpose(1, 0, 2)       # (H, D, dk)
    wv_h = wv.reshape(D, heads, dim_value).transpose(1, 0, 2)     # (H, D, dv)
    wo_h = wo.reshape(heads, dim_value, D)                        # (H, dv, D)
    bq_h = bq.reshape(heads, 1, dim_key)
    bk_h = bk.reshape(heads, 1, dim_key)
    bv_h = bv.reshape(heads, 1, dim_value)

    weights = (wq_h, bq_h, wk_h, bk_h, wv_h, bv_h, wo_h, bo,
               g1, be1, w1, b1, w2, b2, g2, be2)

    def wspec(arr):
        nd = arr.ndim
        # Index map is grid-invariant -> the block is DMA'd once and stays
        # resident.  TODO(synk): pipeline_mode=pl.Buffered(1) would drop the
        # second (unused) buffer and halve weight VMEM; kept default for
        # portability across jax versions.
        return pl.BlockSpec(arr.shape, lambda b, q, _nd=nd: (0,) * _nd)

    kernel = partial(encoder_layer_kernel, heads=heads, dim_key=dim_key,
                     dim_value=dim_value, tq=tq, eps=eps,
                     compute_dtype=compute_dtype)

    # Advisory cost estimate so XLA schedules surrounding ops sensibly.
    mm_flops = 2 * B * L * D * heads * (2 * dim_key + dim_value)       # qkv proj
    mm_flops += 2 * B * heads * L * L * (dim_key + dim_value)          # scores+ctx
    mm_flops += 2 * B * L * heads * dim_value * D                      # out proj
    mm_flops += 4 * B * L * D * Di                                     # ffn
    bytes_io = 4 * (2 * B * L * D + B * heads * L * L) \
        + 4 * sum(int(w.size) for w in weights)
    cost = pl.CostEstimate(flops=int(mm_flops),
                           transcendentals=int(B * heads * L * L),
                           bytes_accessed=int(bytes_io))

    out, attn = pl.pallas_call(
        kernel,
        out_shape=(jax.ShapeDtypeStruct((B, L, D), jnp.float32),
                   jax.ShapeDtypeStruct((B, heads, L, L), jnp.float32)),
        grid=(B, nq),
        in_specs=[pl.BlockSpec((1, L, D), lambda b, q: (b, 0, 0))]
                 + [wspec(w) for w in weights],
        out_specs=(pl.BlockSpec((1, tq, D), lambda b, q: (b, q, 0)),
                   pl.BlockSpec((1, heads, tq, L), lambda b, q: (b, 0, q, 0))),
        compiler_params=pltpu.CompilerParams(
            dimension_semantics=("parallel", "parallel"),
            vmem_limit_bytes=64 * 1024 * 1024),   # fits every gen incl. v7x
        cost_estimate=cost,
    )(x, *weights)
    return out, attn


def make_params(key, dim_model, dim_inner, heads, dim_key, dim_value):
    ks = jax.random.split(key, 8)
    s = 0.1
    wq = s * jax.random.normal(ks[0], (dim_model, heads * dim_key), jnp.float32)
    wk = s * jax.random.normal(ks[1], (dim_model, heads * dim_key), jnp.float32)
    wv = s * jax.random.normal(ks[2], (dim_model, heads * dim_value), jnp.float32)
    wo = s * jax.random.normal(ks[3], (heads * dim_value, dim_model), jnp.float32)
    bq = s * jax.random.normal(ks[4], (1, heads * dim_key), jnp.float32)
    bk = jnp.zeros((1, heads * dim_key), jnp.float32)
    bv = jnp.zeros((1, heads * dim_value), jnp.float32)
    bo = jnp.zeros((1, dim_model), jnp.float32)
    ln1_g = jnp.ones((1, dim_model), jnp.float32)
    ln1_b = jnp.zeros((1, dim_model), jnp.float32)
    w1 = s * jax.random.normal(ks[5], (dim_model, dim_inner), jnp.float32)
    b1 = s * jax.random.normal(ks[6], (1, dim_inner), jnp.float32)
    w2 = s * jax.random.normal(ks[7], (dim_inner, dim_model), jnp.float32)
    b2 = jnp.zeros((1, dim_model), jnp.float32)
    ln2_g = jnp.ones((1, dim_model), jnp.float32)
    ln2_b = jnp.zeros((1, dim_model), jnp.float32)
    return (wq, bq, wk, bk, wv, bv, wo, bo, ln1_g, ln1_b,
            w1, b1, w2, b2, ln2_g, ln2_b)


def reference(x, params, *, heads, dim_key, dim_value, eps=1e-5):
    (wq, bq, wk, bk, wv, bv, wo, bo, g1, be1, w1, b1, w2, b2, g2, be2) = params
    B, L, D = x.shape
    q = (x @ wq + bq).reshape(B, L, heads, dim_key).transpose(0, 2, 1, 3)
    k = (x @ wk + bk).reshape(B, L, heads, dim_key).transpose(0, 2, 1, 3)
    v = (x @ wv + bv).reshape(B, L, heads, dim_value).transpose(0, 2, 1, 3)
    s = jnp.einsum('bhld,bhmd->bhlm', q, k) / math.sqrt(dim_key)
    p = jax.nn.softmax(s, axis=-1)
    ctx = jnp.einsum('bhlm,bhmd->bhld', p, v).transpose(0, 2, 1, 3).reshape(B, L, -1)
    y = ctx @ wo + bo + x
    mu = y.mean(-1, keepdims=True); var = ((y - mu) ** 2).mean(-1, keepdims=True)
    y = (y - mu) * jax.lax.rsqrt(var + eps) * g1 + be1
    z = jnp.maximum(y @ w1 + b1, 0.0) @ w2 + b2 + y
    mu = z.mean(-1, keepdims=True); var = ((z - mu) ** 2).mean(-1, keepdims=True)
    z = (z - mu) * jax.lax.rsqrt(var + eps) * g2 + be2
    return z, p


if __name__ == "__main__":
    B, L = 2, 8
    dim_model, dim_inner, heads, dim_key, dim_value = 32, 64, 4, 8, 8

    key = jax.random.PRNGKey(0)
    kx, kp = jax.random.split(key)
    x = jax.random.normal(kx, (B, L, dim_model), jnp.float32)
    params = make_params(kp, dim_model, dim_inner, heads, dim_key, dim_value)

    ref_out, ref_attn = reference(x, params, heads=heads,
                                  dim_key=dim_key, dim_value=dim_value)

    # fp32 MXU path (exact up to the approx-reciprocal softmax normalization).
    out, attn = encoder_layer(x, params, heads=heads, dim_key=dim_key,
                              dim_value=dim_value, compute_dtype=jnp.float32)
    out = jax.block_until_ready(out)
    attn = jax.block_until_ready(attn)
    assert jnp.allclose(out, ref_out, atol=1e-2, rtol=1e-2)
    assert jnp.allclose(attn, ref_attn, atol=1e-2, rtol=1e-2)

    # bf16 MXU fast path (v6e/v7x): bf16 matmul operands, fp32 accumulation,
    # fp32 softmax/LayerNorm math -> looser tolerances.
    out_bf, attn_bf = encoder_layer(x, params, heads=heads, dim_key=dim_key,
                                    dim_value=dim_value,
                                    compute_dtype=jnp.bfloat16)
    out_bf = jax.block_until_ready(out_bf)
    attn_bf = jax.block_until_ready(attn_bf)
    assert jnp.allclose(out_bf, ref_out, atol=8e-2, rtol=8e-2)
    assert jnp.allclose(attn_bf, ref_attn, atol=3e-2, rtol=3e-2)

    print("KERNEL_OK")
</pallas_src>

<mosaic_0001>
module attributes {stable_mosaic.version = 11 : i64} {
  func.func @encoder_layer_kernel(%arg0: i32, %arg1: i32, %arg2: memref<1x8x32xf32, #tpu.memory_space<vmem>>, %arg3: memref<4x32x8xf32, #tpu.memory_space<vmem>>, %arg4: memref<4x1x8xf32, #tpu.memory_space<vmem>>, %arg5: memref<4x32x8xf32, #tpu.memory_space<vmem>>, %arg6: memref<4x1x8xf32, #tpu.memory_space<vmem>>, %arg7: memref<4x32x8xf32, #tpu.memory_space<vmem>>, %arg8: memref<4x1x8xf32, #tpu.memory_space<vmem>>, %arg9: memref<4x8x32xf32, #tpu.memory_space<vmem>>, %arg10: memref<1x32xf32, #tpu.memory_space<vmem>>, %arg11: memref<1x32xf32, #tpu.memory_space<vmem>>, %arg12: memref<1x32xf32, #tpu.memory_space<vmem>>, %arg13: memref<32x64xf32, #tpu.memory_space<vmem>>, %arg14: memref<1x64xf32, #tpu.memory_space<vmem>>, %arg15: memref<64x32xf32, #tpu.memory_space<vmem>>, %arg16: memref<1x32xf32, #tpu.memory_space<vmem>>, %arg17: memref<1x32xf32, #tpu.memory_space<vmem>>, %arg18: memref<1x32xf32, #tpu.memory_space<vmem>>, %arg19: memref<1x8x32xf32, #tpu.memory_space<vmem>>, %arg20: memref<1x4x8x8xf32, #tpu.memory_space<vmem>>) attributes {dimension_semantics = [#tpu.dimension_semantics<parallel>, #tpu.dimension_semantics<parallel>], iteration_bounds = array<i64: 2, 1>, scalar_prefetch = 0 : i64, scratch_operands = 0 : i64, tpu.core_type = #tpu.core_type<tc>, window_params = [{transform_indices = @transform_0, window_bounds = array<i64: 1, 8, 32>}, {pipeline_mode = #tpu.pipeline_mode<synchronous>, transform_indices = @transform_1, window_bounds = array<i64: 4, 32, 8>}, {pipeline_mode = #tpu.pipeline_mode<synchronous>, transform_indices = @transform_2, window_bounds = array<i64: 4, 1, 8>}, {pipeline_mode = #tpu.pipeline_mode<synchronous>, transform_indices = @transform_3, window_bounds = array<i64: 4, 32, 8>}, {pipeline_mode = #tpu.pipeline_mode<synchronous>, transform_indices = @transform_4, window_bounds = array<i64: 4, 1, 8>}, {pipeline_mode = #tpu.pipeline_mode<synchronous>, transform_indices = @transform_5, window_bounds = array<i64: 4, 32, 8>}, {pipeline_mode = #tpu.pipeline_mode<synchronous>, transform_indices = @transform_6, window_bounds = array<i64: 4, 1, 8>}, {pipeline_mode = #tpu.pipeline_mode<synchronous>, transform_indices = @transform_7, window_bounds = array<i64: 4, 8, 32>}, {pipeline_mode = #tpu.pipeline_mode<synchronous>, transform_indices = @transform_8, window_bounds = array<i64: 1, 32>}, {pipeline_mode = #tpu.pipeline_mode<synchronous>, transform_indices = @transform_9, window_bounds = array<i64: 1, 32>}, {pipeline_mode = #tpu.pipeline_mode<synchronous>, transform_indices = @transform_10, window_bounds = array<i64: 1, 32>}, {pipeline_mode = #tpu.pipeline_mode<synchronous>, transform_indices = @transform_11, window_bounds = array<i64: 32, 64>}, {pipeline_mode = #tpu.pipeline_mode<synchronous>, transform_indices = @transform_12, window_bounds = array<i64: 1, 64>}, {pipeline_mode = #tpu.pipeline_mode<synchronous>, transform_indices = @transform_13, window_bounds = array<i64: 64, 32>}, {pipeline_mode = #tpu.pipeline_mode<synchronous>, transform_indices = @transform_14, window_bounds = array<i64: 1, 32>}, {pipeline_mode = #tpu.pipeline_mode<synchronous>, transform_indices = @transform_15, window_bounds = array<i64: 1, 32>}, {pipeline_mode = #tpu.pipeline_mode<synchronous>, transform_indices = @transform_16, window_bounds = array<i64: 1, 32>}, {transform_indices = @transform_17, window_bounds = array<i64: 1, 8, 32>}, {transform_indices = @transform_18, window_bounds = array<i64: 1, 4, 8, 8>}]} {
    %c0 = arith.constant 0 : index
    %c0_0 = arith.constant 0 : index
    %c0_1 = arith.constant 0 : index
    %0 = vector.load %arg2[%c0, %c0_0, %c0_1] : memref<1x8x32xf32, #tpu.memory_space<vmem>>, vector<1x8x32xf32>
    %1 = vector.shape_cast %0 : vector<1x8x32xf32> to vector<8x32xf32>
    %c8_i32 = arith.constant 8 : i32
    %2 = arith.muli %arg1, %c8_i32 : i32
    %3 = tpu.assume_multiple %2, 8 : i32
    %c0_2 = arith.constant 0 : index
    %4 = arith.index_cast %3 : i32 to index
    %c0_3 = arith.constant 0 : index
    %5 = vector.load %arg2[%c0_2, %4, %c0_3] : memref<1x8x32xf32, #tpu.memory_space<vmem>>, vector<1x8x32xf32>
    %6 = vector.shape_cast %5 : vector<1x8x32xf32> to vector<8x32xf32>
    %7 = vector.shape_cast %1 : vector<8x32xf32> to vector<1x8x32xf32>
    %8 = vector.shape_cast %7 : vector<1x8x32xf32> to vector<1x8x32xf32>
    %9 = vector.broadcast %8 : vector<1x8x32xf32> to vector<4x8x32xf32>
    %10 = vector.shape_cast %6 : vector<8x32xf32> to vector<1x8x32xf32>
    %11 = vector.shape_cast %10 : vector<1x8x32xf32> to vector<1x8x32xf32>
    %12 = vector.broadcast %11 : vector<1x8x32xf32> to vector<4x8x32xf32>
    %c0_4 = arith.constant 0 : index
    %c0_5 = arith.constant 0 : index
    %c0_6 = arith.constant 0 : index
    %13 = vector.load %arg3[%c0_4, %c0_5, %c0_6] : memref<4x32x8xf32, #tpu.memory_space<vmem>>, vector<4x32x8xf32>
    "tpu.trace_start"() <{level = 10 : i32, message = "hqd,hdk->hqk"}> : () -> ()
    %cst = arith.constant dense<0.000000e+00> : vector<4x8x8xf32>
    %14 = tpu.matmul %12, %13, %cst {dimension_numbers = #tpu.dot_dimension_numbers<[2], [1], [1], [2], [0, 0, 0, 1, 1, 2], [0], [0]>} : vector<4x8x32xf32>, vector<4x32x8xf32>, vector<4x8x8xf32> -> vector<4x8x8xf32>
    "tpu.trace_stop"() : () -> ()
    %c0_7 = arith.constant 0 : index
    %c0_8 = arith.constant 0 : index
    %c0_9 = arith.constant 0 : index
    %15 = vector.load %arg4[%c0_7, %c0_8, %c0_9] : memref<4x1x8xf32, #tpu.memory_space<vmem>>, vector<4x1x8xf32>
    %16 = vector.broadcast %15 : vector<4x1x8xf32> to vector<4x8x8xf32>
    %17 = arith.addf %14, %16 : vector<4x8x8xf32>
    %c0_10 = arith.constant 0 : index
    %c0_11 = arith.constant 0 : index
    %c0_12 = arith.constant 0 : index
    %18 = vector.load %arg5[%c0_10, %c0_11, %c0_12] : memref<4x32x8xf32, #tpu.memory_space<vmem>>, vector<4x32x8xf32>
    "tpu.trace_start"() <{level = 10 : i32, message = "hld,hdk->hlk"}> : () -> ()
    %cst_13 = arith.constant dense<0.000000e+00> : vector<4x8x8xf32>
    %19 = tpu.matmul %9, %18, %cst_13 {dimension_numbers = #tpu.dot_dimension_numbers<[2], [1], [1], [2], [0, 0, 0, 1, 1, 2], [0], [0]>} : vector<4x8x32xf32>, vector<4x32x8xf32>, vector<4x8x8xf32> -> vector<4x8x8xf32>
    "tpu.trace_stop"() : () -> ()
    %c0_14 = arith.constant 0 : index
    %c0_15 = arith.constant 0 : index
    %c0_16 = arith.constant 0 : index
    %20 = vector.load %arg6[%c0_14, %c0_15, %c0_16] : memref<4x1x8xf32, #tpu.memory_space<vmem>>, vector<4x1x8xf32>
    %21 = vector.broadcast %20 : vector<4x1x8xf32> to vector<4x8x8xf32>
    %22 = arith.addf %19, %21 : vector<4x8x8xf32>
    %c0_17 = arith.constant 0 : index
    %c0_18 = arith.constant 0 : index
    %c0_19 = arith.constant 0 : index
    %23 = vector.load %arg7[%c0_17, %c0_18, %c0_19] : memref<4x32x8xf32, #tpu.memory_space<vmem>>, vector<4x32x8xf32>
    "tpu.trace_start"() <{level = 10 : i32, message = "hld,hdk->hlk"}> : () -> ()
    %cst_20 = arith.constant dense<0.000000e+00> : vector<4x8x8xf32>
    %24 = tpu.matmul %9, %23, %cst_20 {dimension_numbers = #tpu.dot_dimension_numbers<[2], [1], [1], [2], [0, 0, 0, 1, 1, 2], [0], [0]>} : vector<4x8x32xf32>, vector<4x32x8xf32>, vector<4x8x8xf32> -> vector<4x8x8xf32>
    "tpu.trace_stop"() : () -> ()
    %c0_21 = arith.constant 0 : index
    %c0_22 = arith.constant 0 : index
    %c0_23 = arith.constant 0 : index
    %25 = vector.load %arg8[%c0_21, %c0_22, %c0_23] : memref<4x1x8xf32, #tpu.memory_space<vmem>>, vector<4x1x8xf32>
    %26 = vector.broadcast %25 : vector<4x1x8xf32> to vector<4x8x8xf32>
    %27 = arith.addf %24, %26 : vector<4x8x8xf32>
    %cst_24 = arith.constant 0.353553385 : f32
    %28 = vector.broadcast %cst_24 : f32 to vector<4x8x8xf32>
    %29 = arith.mulf %17, %28 : vector<4x8x8xf32>
    "tpu.trace_start"() <{level = 10 : i32, message = "hqk,hlk->hql"}> : () -> ()
    %cst_25 = arith.constant dense<0.000000e+00> : vector<4x8x8xf32>
    %30 = tpu.matmul %29, %22, %cst_25 {dimension_numbers = #tpu.dot_dimension_numbers<[2], [2], [1], [1], [0, 0, 0, 1, 1, 1], [0], [0]>} : vector<4x8x8xf32>, vector<4x8x8xf32>, vector<4x8x8xf32> -> vector<4x8x8xf32>
    "tpu.trace_stop"() : () -> ()
    %cst_26 = arith.constant dense<0xFF800000> : vector<4x8xf32>
    %31 = vector.multi_reduction <maximumf>, %30, %cst_26 [2] : vector<4x8x8xf32> to vector<4x8xf32>
    %32 = vector.shape_cast %31 : vector<4x8xf32> to vector<4x8x1xf32>
    %33 = vector.broadcast %32 : vector<4x8x1xf32> to vector<4x8x8xf32>
    %34 = arith.subf %30, %33 : vector<4x8x8xf32>
    %35 = math.exp %34 : vector<4x8x8xf32>
    %cst_27 = arith.constant dense<0.000000e+00> : vector<4x8xf32>
    %36 = vector.multi_reduction <add>, %35, %cst_27 [2] : vector<4x8x8xf32> to vector<4x8xf32>
    %37 = vector.shape_cast %36 : vector<4x8xf32> to vector<4x8x1xf32>
    %38 = tpu.reciprocal %37 {approx = true} : vector<4x8x1xf32> -> vector<4x8x1xf32>
    %39 = vector.broadcast %38 : vector<4x8x1xf32> to vector<4x8x8xf32>
    %40 = arith.mulf %35, %39 : vector<4x8x8xf32>
    %c0_28 = arith.constant 0 : index
    %c0_29 = arith.constant 0 : index
    %c0_30 = arith.constant 0 : index
    %c0_31 = arith.constant 0 : index
    %41 = vector.load %arg20[%c0_28, %c0_29, %c0_30, %c0_31] : memref<1x4x8x8xf32, #tpu.memory_space<vmem>>, vector<1x4x8x8xf32>
    %42 = vector.shape_cast %41 : vector<1x4x8x8xf32> to vector<4x8x8xf32>
    %43 = vector.shape_cast %40 : vector<4x8x8xf32> to vector<1x4x8x8xf32>
    tpu.vector_store %arg20[%c0_28, %c0_29, %c0_30, %c0_31], %43 {strides = array<i32>} : memref<1x4x8x8xf32, #tpu.memory_space<vmem>>, vector<1x4x8x8xf32>,
    "tpu.trace_start"() <{level = 10 : i32, message = "hql,hlk->hqk"}> : () -> ()
    %cst_32 = arith.constant dense<0.000000e+00> : vector<4x8x8xf32>
    %44 = tpu.matmul %40, %27, %cst_32 {dimension_numbers = #tpu.dot_dimension_numbers<[2], [1], [1], [2], [0, 0, 0, 1, 1, 2], [0], [0]>} : vector<4x8x8xf32>, vector<4x8x8xf32>, vector<4x8x8xf32> -> vector<4x8x8xf32>
    "tpu.trace_stop"() : () -> ()
    %c0_33 = arith.constant 0 : index
    %c0_34 = arith.constant 0 : index
    %c0_35 = arith.constant 0 : index
    %45 = vector.load %arg9[%c0_33, %c0_34, %c0_35] : memref<4x8x32xf32, #tpu.memory_space<vmem>>, vector<4x8x32xf32>
    "tpu.trace_start"() <{level = 10 : i32, message = "hqk,hkd->hqd"}> : () -> ()
    %cst_36 = arith.constant dense<0.000000e+00> : vector<4x8x32xf32>
    %46 = tpu.matmul %44, %45, %cst_36 {dimension_numbers = #tpu.dot_dimension_numbers<[2], [1], [1], [2], [0, 0, 0, 1, 1, 2], [0], [0]>} : vector<4x8x8xf32>, vector<4x8x32xf32>, vector<4x8x32xf32> -> vector<4x8x32xf32>
    "tpu.trace_stop"() : () -> ()
    %cst_37 = arith.constant dense<0.000000e+00> : vector<8x32xf32>
    %47 = vector.multi_reduction <add>, %46, %cst_37 [0] : vector<4x8x32xf32> to vector<8x32xf32>
    %c0_38 = arith.constant 0 : index
    %c0_39 = arith.constant 0 : index
    %48 = vector.load %arg10[%c0_38, %c0_39] : memref<1x32xf32, #tpu.memory_space<vmem>>, vector<1x32xf32>
    %49 = vector.broadcast %48 : vector<1x32xf32> to vector<8x32xf32>
    %50 = arith.addf %47, %49 : vector<8x32xf32>
    %51 = arith.addf %50, %6 : vector<8x32xf32>
    %cst_40 = arith.constant dense<0.000000e+00> : vector<8xf32>
    %52 = vector.multi_reduction <add>, %51, %cst_40 [1] : vector<8x32xf32> to vector<8xf32>
    %53 = vector.shape_cast %52 : vector<8xf32> to vector<8x1xf32>
    %cst_41 = arith.constant 3.200000e+01 : f32
    %54 = vector.broadcast %cst_41 : f32 to vector<8x1xf32>
    %55 = arith.divf %53, %54 : vector<8x1xf32>
    %56 = vector.broadcast %55 : vector<8x1xf32> to vector<8x32xf32>
    %57 = arith.subf %51, %56 : vector<8x32xf32>
    %58 = arith.mulf %57, %57 : vector<8x32xf32>
    %cst_42 = arith.constant dense<0.000000e+00> : vector<8xf32>
    %59 = vector.multi_reduction <add>, %58, %cst_42 [1] : vector<8x32xf32> to vector<8xf32>
    %60 = vector.shape_cast %59 : vector<8xf32> to vector<8x1xf32>
    %cst_43 = arith.constant 3.200000e+01 : f32
    %61 = vector.broadcast %cst_43 : f32 to vector<8x1xf32>
    %62 = arith.divf %60, %61 : vector<8x1xf32>
    %63 = vector.broadcast %55 : vector<8x1xf32> to vector<8x32xf32>
    %64 = arith.subf %51, %63 : vector<8x32xf32>
    %cst_44 = arith.constant 9.99999974E-6 : f32
    %65 = vector.broadcast %cst_44 : f32 to vector<8x1xf32>
    %66 = arith.addf %62, %65 : vector<8x1xf32>
    %67 = math.rsqrt %66 : vector<8x1xf32>
    %68 = vector.broadcast %67 : vector<8x1xf32> to vector<8x32xf32>
    %69 = arith.mulf %64, %68 : vector<8x32xf32>
    %c0_45 = arith.constant 0 : index
    %c0_46 = arith.constant 0 : index
    %70 = vector.load %arg11[%c0_45, %c0_46] : memref<1x32xf32, #tpu.memory_space<vmem>>, vector<1x32xf32>
    %71 = vector.broadcast %70 : vector<1x32xf32> to vector<8x32xf32>
    %72 = arith.mulf %69, %71 : vector<8x32xf32>
    %c0_47 = arith.constant 0 : index
    %c0_48 = arith.constant 0 : index
    %73 = vector.load %arg12[%c0_47, %c0_48] : memref<1x32xf32, #tpu.memory_space<vmem>>, vector<1x32xf32>
    %74 = vector.broadcast %73 : vector<1x32xf32> to vector<8x32xf32>
    %75 = arith.addf %72, %74 : vector<8x32xf32>
    %c0_49 = arith.constant 0 : index
    %c0_50 = arith.constant 0 : index
    %76 = vector.load %arg13[%c0_49, %c0_50] : memref<32x64xf32, #tpu.memory_space<vmem>>, vector<32x64xf32>
    %cst_51 = arith.constant dense<0.000000e+00> : vector<8x64xf32>
    %77 = tpu.matmul %75, %76, %cst_51 {dimension_numbers = #tpu.dot_dimension_numbers<[1], [0], [0], [1], [0, 0, 1, 1], [], []>} : vector<8x32xf32>, vector<32x64xf32>, vector<8x64xf32> -> vector<8x64xf32>
    %c0_52 = arith.constant 0 : index
    %c0_53 = arith.constant 0 : index
    %78 = vector.load %arg14[%c0_52, %c0_53] : memref<1x64xf32, #tpu.memory_space<vmem>>, vector<1x64xf32>
    %79 = vector.broadcast %78 : vector<1x64xf32> to vector<8x64xf32>
    %80 = arith.addf %77, %79 : vector<8x64xf32>
    %cst_54 = arith.constant 0.000000e+00 : f32
    %81 = vector.broadcast %cst_54 : f32 to vector<8x64xf32>
    %82 = arith.maximumf %80, %81 : vector<8x64xf32>
    %c0_55 = arith.constant 0 : index
    %c0_56 = arith.constant 0 : index
    %83 = vector.load %arg15[%c0_55, %c0_56] : memref<64x32xf32, #tpu.memory_space<vmem>>, vector<64x32xf32>
    %cst_57 = arith.constant dense<0.000000e+00> : vector<8x32xf32>
    %84 = tpu.matmul %82, %83, %cst_57 {dimension_numbers = #tpu.dot_dimension_numbers<[1], [0], [0], [1], [0, 0, 1, 1], [], []>} : vector<8x64xf32>, vector<64x32xf32>, vector<8x32xf32> -> vector<8x32xf32>
    %c0_58 = arith.constant 0 : index
    %c0_59 = arith.constant 0 : index
    %85 = vector.load %arg16[%c0_58, %c0_59] : memref<1x32xf32, #tpu.memory_space<vmem>>, vector<1x32xf32>
    %86 = vector.broadcast %85 : vector<1x32xf32> to vector<8x32xf32>
    %87 = arith.addf %84, %86 : vector<8x32xf32>
    %88 = arith.addf %87, %75 : vector<8x32xf32>
    %cst_60 = arith.constant dense<0.000000e+00> : vector<8xf32>
    %89 = vector.multi_reduction <add>, %88, %cst_60 [1] : vector<8x32xf32> to vector<8xf32>
    %90 = vector.shape_cast %89 : vector<8xf32> to vector<8x1xf32>
    %cst_61 = arith.constant 3.200000e+01 : f32
    %91 = vector.broadcast %cst_61 : f32 to vector<8x1xf32>
    %92 = arith.divf %90, %91 : vector<8x1xf32>
    %93 = vector.broadcast %92 : vector<8x1xf32> to vector<8x32xf32>
    %94 = arith.subf %88, %93 : vector<8x32xf32>
    %95 = arith.mulf %94, %94 : vector<8x32xf32>
    %cst_62 = arith.constant dense<0.000000e+00> : vector<8xf32>
    %96 = vector.multi_reduction <add>, %95, %cst_62 [1] : vector<8x32xf32> to vector<8xf32>
    %97 = vector.shape_cast %96 : vector<8xf32> to vector<8x1xf32>
    %cst_63 = arith.constant 3.200000e+01 : f32
    %98 = vector.broadcast %cst_63 : f32 to vector<8x1xf32>
    %99 = arith.divf %97, %98 : vector<8x1xf32>
    %100 = vector.broadcast %92 : vector<8x1xf32> to vector<8x32xf32>
    %101 = arith.subf %88, %100 : vector<8x32xf32>
    %cst_64 = arith.constant 9.99999974E-6 : f32
    %102 = vector.broadcast %cst_64 : f32 to vector<8x1xf32>
    %103 = arith.addf %99, %102 : vector<8x1xf32>
    %104 = math.rsqrt %103 : vector<8x1xf32>
    %105 = vector.broadcast %104 : vector<8x1xf32> to vector<8x32xf32>
    %106 = arith.mulf %101, %105 : vector<8x32xf32>
    %c0_65 = arith.constant 0 : index
    %c0_66 = arith.constant 0 : index
    %107 = vector.load %arg17[%c0_65, %c0_66] : memref<1x32xf32, #tpu.memory_space<vmem>>, vector<1x32xf32>
    %108 = vector.broadcast %107 : vector<1x32xf32> to vector<8x32xf32>
    %109 = arith.mulf %106, %108 : vector<8x32xf32>
    %c0_67 = arith.constant 0 : index
    %c0_68 = arith.constant 0 : index
    %110 = vector.load %arg18[%c0_67, %c0_68] : memref<1x32xf32, #tpu.memory_space<vmem>>, vector<1x32xf32>
    %111 = vector.broadcast %110 : vector<1x32xf32> to vector<8x32xf32>
    %112 = arith.addf %109, %111 : vector<8x32xf32>
    %c0_69 = arith.constant 0 : index
    %c0_70 = arith.constant 0 : index
    %c0_71 = arith.constant 0 : index
    %113 = vector.load %arg19[%c0_69, %c0_70, %c0_71] : memref<1x8x32xf32, #tpu.memory_space<vmem>>, vector<1x8x32xf32>
    %114 = vector.shape_cast %113 : vector<1x8x32xf32> to vector<8x32xf32>
    %115 = vector.shape_cast %112 : vector<8x32xf32> to vector<1x8x32xf32>
    tpu.vector_store %arg19[%c0_69, %c0_70, %c0_71], %115 {strides = array<i32>} : memref<1x8x32xf32, #tpu.memory_space<vmem>>, vector<1x8x32xf32>,
    return
  }
  func.func @transform_0(%arg0: i32, %arg1: i32) -> (i32, i32, i32) {
    %c0_i32 = arith.constant 0 : i32
    %c0_i32_0 = arith.constant 0 : i32
    %c0_i32_1 = arith.constant 0 : i32
    return %arg0, %c0_i32, %c0_i32_0 : i32, i32, i32
  }
  func.func @transform_1(%arg0: i32, %arg1: i32) -> (i32, i32, i32) {
    %c0_i32 = arith.constant 0 : i32
    %c0_i32_0 = arith.constant 0 : i32
    %c0_i32_1 = arith.constant 0 : i32
    %c0_i32_2 = arith.constant 0 : i32
    return %c0_i32, %c0_i32_0, %c0_i32_1 : i32, i32, i32
  }
  func.func @transform_2(%arg0: i32, %arg1: i32) -> (i32, i32, i32) {
    %c0_i32 = arith.constant 0 : i32
    %c0_i32_0 = arith.constant 0 : i32
    %c0_i32_1 = arith.constant 0 : i32
    %c0_i32_2 = arith.constant 0 : i32
    return %c0_i32, %c0_i32_0, %c0_i32_1 : i32, i32, i32
  }
  func.func @transform_3(%arg0: i32, %arg1: i32) -> (i32, i32, i32) {
    %c0_i32 = arith.constant 0 : i32
    %c0_i32_0 = arith.constant 0 : i32
    %c0_i32_1 = arith.constant 0 : i32
    %c0_i32_2 = arith.constant 0 : i32
    return %c0_i32, %c0_i32_0, %c0_i32_1 : i32, i32, i32
  }
  func.func @transform_4(%arg0: i32, %arg1: i32) -> (i32, i32, i32) {
    %c0_i32 = arith.constant 0 : i32
    %c0_i32_0 = arith.constant 0 : i32
    %c0_i32_1 = arith.constant 0 : i32
    %c0_i32_2 = arith.constant 0 : i32
    return %c0_i32, %c0_i32_0, %c0_i32_1 : i32, i32, i32
  }
  func.func @transform_5(%arg0: i32, %arg1: i32) -> (i32, i32, i32) {
    %c0_i32 = arith.constant 0 : i32
    %c0_i32_0 = arith.constant 0 : i32
    %c0_i32_1 = arith.constant 0 : i32
    %c0_i32_2 = arith.constant 0 : i32
    return %c0_i32, %c0_i32_0, %c0_i32_1 : i32, i32, i32
  }
  func.func @transform_6(%arg0: i32, %arg1: i32) -> (i32, i32, i32) {
    %c0_i32 = arith.constant 0 : i32
    %c0_i32_0 = arith.constant 0 : i32
    %c0_i32_1 = arith.constant 0 : i32
    %c0_i32_2 = arith.constant 0 : i32
    return %c0_i32, %c0_i32_0, %c0_i32_1 : i32, i32, i32
  }
  func.func @transform_7(%arg0: i32, %arg1: i32) -> (i32, i32, i32) {
    %c0_i32 = arith.constant 0 : i32
    %c0_i32_0 = arith.constant 0 : i32
    %c0_i32_1 = arith.constant 0 : i32
    %c0_i32_2 = arith.constant 0 : i32
    return %c0_i32, %c0_i32_0, %c0_i32_1 : i32, i32, i32
  }
  func.func @transform_8(%arg0: i32, %arg1: i32) -> (i32, i32) {
    %c0_i32 = arith.constant 0 : i32
    %c0_i32_0 = arith.constant 0 : i32
    %c0_i32_1 = arith.constant 0 : i32
    return %c0_i32, %c0_i32_0 : i32, i32
  }
  func.func @transform_9(%arg0: i32, %arg1: i32) -> (i32, i32) {
    %c0_i32 = arith.constant 0 : i32
    %c0_i32_0 = arith.constant 0 : i32
    %c0_i32_1 = arith.constant 0 : i32
    return %c0_i32, %c0_i32_0 : i32, i32
  }
  func.func @transform_10(%arg0: i32, %arg1: i32) -> (i32, i32) {
    %c0_i32 = arith.constant 0 : i32
    %c0_i32_0 = arith.constant 0 : i32
    %c0_i32_1 = arith.constant 0 : i32
    return %c0_i32, %c0_i32_0 : i32, i32
  }
  func.func @transform_11(%arg0: i32, %arg1: i32) -> (i32, i32) {
    %c0_i32 = arith.constant 0 : i32
    %c0_i32_0 = arith.constant 0 : i32
    %c0_i32_1 = arith.constant 0 : i32
    return %c0_i32, %c0_i32_0 : i32, i32
  }
  func.func @transform_12(%arg0: i32, %arg1: i32) -> (i32, i32) {
    %c0_i32 = arith.constant 0 : i32
    %c0_i32_0 = arith.constant 0 : i32
    %c0_i32_1 = arith.constant 0 : i32
    return %c0_i32, %c0_i32_0 : i32, i32
  }
  func.func @transform_13(%arg0: i32, %arg1: i32) -> (i32, i32) {
    %c0_i32 = arith.constant 0 : i32
    %c0_i32_0 = arith.constant 0 : i32
    %c0_i32_1 = arith.constant 0 : i32
    return %c0_i32, %c0_i32_0 : i32, i32
  }
  func.func @transform_14(%arg0: i32, %arg1: i32) -> (i32, i32) {
    %c0_i32 = arith.constant 0 : i32
    %c0_i32_0 = arith.constant 0 : i32
    %c0_i32_1 = arith.constant 0 : i32
    return %c0_i32, %c0_i32_0 : i32, i32
  }
  func.func @transform_15(%arg0: i32, %arg1: i32) -> (i32, i32) {
    %c0_i32 = arith.constant 0 : i32
    %c0_i32_0 = arith.constant 0 : i32
    %c0_i32_1 = arith.constant 0 : i32
    return %c0_i32, %c0_i32_0 : i32, i32
  }
  func.func @transform_16(%arg0: i32, %arg1: i32) -> (i32, i32) {
    %c0_i32 = arith.constant 0 : i32
    %c0_i32_0 = arith.constant 0 : i32
    %c0_i32_1 = arith.constant 0 : i32
    return %c0_i32, %c0_i32_0 : i32, i32
  }
  func.func @transform_17(%arg0: i32, %arg1: i32) -> (i32, i32, i32) {
    %c0_i32 = arith.constant 0 : i32
    %c0_i32_0 = arith.constant 0 : i32
    return %arg0, %arg1, %c0_i32 : i32, i32, i32
  }
  func.func @transform_18(%arg0: i32, %arg1: i32) -> (i32, i32, i32, i32) {
    %c0_i32 = arith.constant 0 : i32
    %c0_i32_0 = arith.constant 0 : i32
    %c0_i32_1 = arith.constant 0 : i32
    return %arg0, %c0_i32, %arg1, %c0_i32_0 : i32, i32, i32, i32
  }
}

</mosaic_0001>

<bundles_post_ra>
// kernel: tpu_custom_call.1
= control target key start
LH: loop header
LB: loop body
LE: loop exit
PB: predicated region body
PF: predicated region fallthrough
CT: control target
= control target key end

     0   :  { %s5605_s0 = inlined_call_operand.hbm [shape: f32[2,8,32], index: 0, kind: input, shape index: {}]   ;;  %s5606_s1 = inlined_call_operand.hbm [shape: f32[4,32,8], index: 1, kind: input, shape index: {}]   ;;  %s5607_s2 = inlined_call_operand.hbm [shape: f32[4,1,8], index: 2, kind: input, shape index: {}]   ;;  %s5608_s3 = inlined_call_operand.hbm [shape: f32[4,32,8], index: 3, kind: input, shape index: {}]   ;;  %s5609_s4 = inlined_call_operand.hbm [shape: f32[4,1,8], index: 4, kind: input, shape index: {}]   ;;  %s5610_s5 = inlined_call_operand.hbm [shape: f32[4,32,8], index: 5, kind: input, shape index: {}]   ;;  %s5611_s6 = inlined_call_operand.hbm [shape: f32[4,1,8], index: 6, kind: input, shape index: {}]   ;;  %s5612_s7 = inlined_call_operand.hbm [shape: f32[4,8,32], index: 7, kind: input, shape index: {}]   ;;  %s5613_s8 = inlined_call_operand.hbm [shape: f32[1,32], index: 8, kind: input, shape index: {}]   ;;  %s5614_s9 = inlined_call_operand.hbm [shape: f32[1,32], index: 9, kind: input, shape index: {}]   ;;  %s5615_s10 = inlined_call_operand.hbm [shape: f32[1,32], index: 10, kind: input, shape index: {}]   ;;  %s5616_s11 = inlined_call_operand.hbm [shape: f32[32,64], index: 11, kind: input, shape index: {}]   ;;  %s5617_s12 = inlined_call_operand.hbm [shape: f32[1,64], index: 12, kind: input, shape index: {}]   ;;  %s5618_s13 = inlined_call_operand.hbm [shape: f32[64,32], index: 13, kind: input, shape index: {}]   ;;  %s5619_s14 = inlined_call_operand.hbm [shape: f32[1,32], index: 14, kind: input, shape index: {}]   ;;  %s5620_s15 = inlined_call_operand.hbm [shape: f32[1,32], index: 15, kind: input, shape index: {}]   ;;  %s5621_s16 = inlined_call_operand.hbm [shape: f32[1,32], index: 16, kind: input, shape index: {}]   ;;  %s5622_s17 = inlined_call_operand.hbm [shape: f32[2,8,32], index: 17, kind: output, shape index: {0}]   ;;  %s5623_s18 = inlined_call_operand.hbm [shape: f32[2,4,8,8], index: 18, kind: output, shape index: {1}]  }
   0x1   :  { %5645 = sst [smem:[#allocation51_spill]] %s5605_s0 }
   0x2   :  { %5646 = sst [smem:[#allocation52_spill]] %s5606_s1 }
   0x3   :  { %5647 = sst [smem:[#allocation53_spill]] %s5607_s2 }
   0x4   :  { %5648 = sst [smem:[#allocation54_spill]] %s5608_s3 }
   0x5   :  { %5649 = sst [smem:[#allocation55_spill]] %s5609_s4 }
   0x6   :  { %5650 = sst [smem:[#allocation56_spill]] %s5610_s5 }
   0x7   :  { %5651 = sst [smem:[#allocation57_spill]] %s5611_s6 }
   0x8   :  { %5652 = sst [smem:[#allocation58_spill]] %s5612_s7 }
   0x9   :  { %5653 = sst [smem:[#allocation59_spill]] %s5622_s17 }
   0xa   :  { %5654 = sst [smem:[#allocation60_spill]] %s5623_s18 }
   0xb   :  { %24 = vsyncpa [#allocation3], 0 }
   0xc   :  { %26 = vsyncpa [#allocation3 + $0x1], 0 }
   0xd   :  { %27 = vsyncpa [#allocation6], 0 }
   0xe   :  { %28 = vsyncpa [#allocation9], 0 }
   0xf   :  { %29 = vsyncpa [#allocation12], 0 }
  0x10   :  { %30 = vsyncpa [#allocation15], 0 }
  0x11   :  { %31 = vsyncpa [#allocation18], 0 }
  0x12   :  { %32 = vsyncpa [#allocation21], 0 }
  0x13   :  { %33 = vsyncpa [#allocation24], 0 }
  0x14   :  { %34 = vsyncpa [#allocation27], 0 }
  0x15   :  { %35 = vsyncpa [#allocation4], 0 }
  0x16   :  { %37 = vsyncpa [#allocation4 + $0x1], 0 }
  0x17   :  { %38 = vsyncpa [#allocation31], 0 }
  0x18   :  { %40 = vsyncpa [#allocation31 + $0x1], 0  ;;  %s4834_s27 = smov 0   ;;  %s4836_s28 = smov 0  }
  0x19   :  { %s4838_s29 = smov 0   ;;  %s4840_s30 = smov 0  }
  0x1a   :  { %s4842_s0 = smov 0   ;;  %s4844_s19 = smov 0  }
  0x1b LB: > { %5655 = sst [smem:[#allocation43_spill]] %s4689_s27  ;;  %s5627_s1 = sadd.s32 4294967295, %s4709_s19   ;;  %s4709_s19 = sphi %s4844_s19, %s46_s19   ;;  %s4705_s0 = sphi %s4842_s0, %s5707_s0   ;;  %s4701_s30 = sphi %s4840_s30, %s5705_s30   ;;  %s4697_s29 = sphi %s4838_s29, %s5706_s29   ;;  %s4693_s28 = sphi %s4836_s28, %s5704_s28   ;;  %s4689_s27 = sphi %s4834_s27, %s5703_s27  }
  0x1c   : > { %5656 = sst [smem:[#allocation44_spill]] %s4693_s28  ;;  %p3321_p0 = scmp.ge.s32.totalorder %s4709_s19, 1 }
  0x1d   : > { %5657 = sst [smem:[#allocation45_spill]] %s4697_s29  ;;  %p4868_p1 = scmp.eq.s32.totalorder %s5627_s1, 0 }
  0x1e   : > { %5658 = sst [smem:[#allocation46_spill]] %s4701_s30  ;;  %p481_p2 = scmp.lt.s32.totalorder %s4709_s19, 3 }
  0x1f   : > { %5659 = sst [smem:[#allocation47_spill]] %s4705_s0  ;;  %s4711_s22 = smov [#allocation5]  }
  0x20   : > { %5660 = sst [smem:[#allocation48_spill]] %s4709_s19  ;;  %p4873_p3 = pnand %p3321_p0, %p481_p2 }
  0x21   : > { %s5661_s20 = scalar_select %p4868_p1, 1, 0 }
  0x22   : > { %s5663_s21 = scalar_select %p4873_p3, 1, 0 }
  0x23   : > { %5662 = sst [smem:[#allocation49_spill]] %s5661_s20  ;;  %s493_s2 = sshll.u32 %s4711_s22, 4  ;;  %s4877_s2 = int_to_ptr.vmem [resolvable:$true] %s493_s2 }
  0x24   : > { %5664 = sst [smem:[#allocation50_spill]] %s5663_s21  ;;  %p3898_p4 = pneg %p4873_p3 }
  0x25   : > { %s4712_s24 = smov [#allocation8]   ;;  %s4713_s26 = smov [#allocation11]  }
  0x26   : > { %p4884_p6 = pnand %p3898_p4, %p4868_p1  ;;  %s519_s25 = sshll.u32 %s4712_s24, 4  ;;  %s4888_s25 = int_to_ptr.vmem [resolvable:$true] %s519_s25 }
  0x27   : > { %s4890_s1 = sshll.u32 %s4713_s26, 4  ;;  %s5666_s18 = sld [smem:[#allocation52_spill]]  ;;  %s546_s1 = int_to_ptr.vmem [resolvable:$true] %s4890_s1 }
  0x28   : > { %p4900_p8 = pneg %p4884_p6 }
  0x2d   : > { %s4085_s30 = scalar_lea.hbm %s5666_s18, 2048 }
  0x2e   : > { %p4086_p7 = scmp.ne.s32.totalorder %s5666_s18, %s4085_s30  ;;  %p4092_p11 = scmp.lt.u32.totalorder %s4085_s30, %s5666_s18 }
  0x30   : > { %p4088_p9 = pnand %p4900_p8, %p4086_p7 }
  0x32   : > { %p4089_p10 = pneg %p4088_p9 }
  0x34   : > { %p4094_p12 = pnand %p4092_p11, %p4089_p10 }
  0x36   : > { %4097 = shalt.err (!%p4094_p12)
}
  0x37   : > { %s4098_s17 = scalar_lea.vmem %s4877_s2, 2048  ;;  %p4106_p4 = scmp.lt.s32.totalorder %s4877_s2, %s4877_s2 }
  0x38   : > { %p4099_p13 = scmp.ne.s32.totalorder %s4877_s2, %s4098_s17  ;;  %p4107_p5 = scmp.lt.s32.totalorder %s4098_s17, %s4098_s17 }
  0x3a   : > { %p4101_p0 = pnand %p4099_p13, %p4900_p8  ;;  %p4108_p7 = por %p4107_p5, %p4106_p4 }
  0x3c   : > { %p4102_p2 = pneg %p4101_p0 }
  0x3e   : > { %p4109_p9 = pnand %p4108_p7, %p4102_p2 }
  0x40   : > { %4112 = shalt.err (!%p4109_p9)
}
  0x41   : > { %s4714_s27 = smov 128   ;;  %s4715_s30 = smov 8  }
  0x42   : > { %3901 = dma.hbm_to_vmem [thread:$0]  (!%p4884_p6), %s5666_s18, 2048, %s4877_s2, [#allocation6], %s4714_s27, %s4714_s27, %s4715_s30  }
  0x43   : > { %s5668_s3 = sld [smem:[#allocation54_spill]] }
  0x49   : > { %s4113_s17 = scalar_lea.hbm %s5668_s3, 2048 }
  0x4a   : > { %p4114_p5 = scmp.ne.s32.totalorder %s5668_s3, %s4113_s17  ;;  %p4120_p12 = scmp.lt.u32.totalorder %s4113_s17, %s5668_s3 }
  0x4c   : > { %p4116_p10 = pnand %p4114_p5, %p4900_p8 }
  0x4e   : > { %p4117_p11 = pneg %p4116_p10 }
  0x50   : > { %p4122_p13 = pnand %p4120_p12, %p4117_p11 }
  0x52   : > { %4125 = shalt.err (!%p4122_p13)
}
  0x53   : > { %s4126_s2 = scalar_lea.vmem %s4888_s25, 2048  ;;  %p4134_p7 = scmp.lt.s32.totalorder %s4888_s25, %s4888_s25 }
  0x54   : > { %p4127_p0 = scmp.ne.s32.totalorder %s4888_s25, %s4126_s2  ;;  %p4135_p9 = scmp.lt.s32.totalorder %s4126_s2, %s4126_s2 }
  0x56   : > { %p4129_p2 = pnand %p4127_p0, %p4900_p8  ;;  %p4136_p5 = por %p4135_p9, %p4134_p7 }
  0x58   : > { %p4130_p4 = pneg %p4129_p2 }
  0x5a   : > { %p4137_p10 = pnand %p4136_p5, %p4130_p4 }
  0x5c   : > { %4140 = shalt.err (!%p4137_p10)
}
  0x5d   : > { %3907 = dma.hbm_to_vmem [thread:$0]  (!%p4884_p6), %s5668_s3, 2048, %s4888_s25, [#allocation9], %s4714_s27, %s4714_s27, %s4715_s30  }
  0x5e   : > { %s5669_s5 = sld [smem:[#allocation56_spill]] }
  0x64   : > { %s4141_s21 = scalar_lea.hbm %s5669_s5, 2048 }
  0x65   : > { %p4142_p11 = scmp.ne.s32.totalorder %s5669_s5, %s4141_s21  ;;  %p4148_p0 = scmp.lt.u32.totalorder %s4141_s21, %s5669_s5 }
  0x67   : > { %p4144_p12 = pnand %p4142_p11, %p4900_p8 }
  0x69   : > { %p4145_p13 = pneg %p4144_p12 }
  0x6b   : > { %p4150_p2 = pnand %p4148_p0, %p4145_p13 }
  0x6d   : > { %4153 = shalt.err (!%p4150_p2)
}
  0x6e   : > { %s4154_s2 = scalar_lea.vmem %s546_s1, 2048  ;;  %p4162_p5 = scmp.lt.s32.totalorder %s546_s1, %s546_s1 }
  0x6f   : > { %p4155_p4 = scmp.ne.s32.totalorder %s546_s1, %s4154_s2  ;;  %p4163_p10 = scmp.lt.s32.totalorder %s4154_s2, %s4154_s2 }
  0x71   : > { %p4157_p7 = pnand %p4155_p4, %p4900_p8  ;;  %p4164_p3 = por %p4163_p10, %p4162_p5 }
  0x73   : > { %p4158_p9 = pneg %p4157_p7 }
  0x75   : > { %p4165_p1 = pnand %p4164_p3, %p4158_p9 }
  0x77   : > { %4168 = shalt.err (!%p4165_p1)
}
  0x78   : > { %3913 = dma.hbm_to_vmem [thread:$0]  (!%p4884_p6), %s5669_s5, 2048, %s546_s1, [#allocation12], %s4714_s27, %s4714_s27, %s4715_s30  }
  0x79   : > { %s4716_s29 = smov [#allocation14]   ;;  %s4717_s19 = smov [#allocation17]  }
  0x7a   : > { %s571_s0 = sshll.u32 %s4716_s29, 4  ;;  %s596_s21 = sshll.u32 %s4717_s19, 4  ;;  %s572_s0 = int_to_ptr.vmem [resolvable:$true] %s571_s0  ;;  %s597_s21 = int_to_ptr.vmem [resolvable:$true] %s596_s21 }
  0x7b   : > { %s5670_s7 = sld [smem:[#allocation58_spill]] }
  0x81   : > { %s4169_s26 = scalar_lea.hbm %s5670_s7, 512 }
  0x82   : > { %p4170_p1 = scmp.ne.s32.totalorder %s5670_s7, %s4169_s26  ;;  %p4176_p12 = scmp.lt.u32.totalorder %s4169_s26, %s5670_s7 }
  0x84   : > { %p4172_p3 = pnand %p4170_p1, %p4900_p8 }
  0x86   : > { %p4173_p11 = pneg %p4172_p3 }
  0x88   : > { %p4178_p13 = pnand %p4176_p12, %p4173_p11 }
  0x8a   : > { %4181 = shalt.err (!%p4178_p13)
}
  0x8b   : > { %s4182_s1 = scalar_lea.vmem %s572_s0, 512  ;;  %p4190_p7 = scmp.lt.s32.totalorder %s572_s0, %s572_s0 }
  0x8c   : > { %p4183_p0 = scmp.ne.s32.totalorder %s572_s0, %s4182_s1  ;;  %p4191_p9 = scmp.lt.s32.totalorder %s4182_s1, %s4182_s1 }
  0x8e   : > { %p4185_p2 = pnand %p4183_p0, %p4900_p8  ;;  %p4192_p5 = por %p4191_p9, %p4190_p7 }
  0x90   : > { %p4186_p4 = pneg %p4185_p2 }
  0x92   : > { %p4193_p10 = pnand %p4192_p5, %p4186_p4 }
  0x94   : > { %4196 = shalt.err (!%p4193_p10)
}
  0x95   : > { %3919 = dma.hbm_to_vmem [thread:$0]  (!%p4884_p6), %s5670_s7, 512, %s572_s0, [#allocation15], %s4714_s27, %s4714_s27, %s4715_s30  }
  0x96   : > { %s4197_s22 = scalar_lea.hbm %s5614_s9, 16 }
  0x97   : > { %p4198_p1 = scmp.ne.s32.totalorder %s5614_s9, %s4197_s22  ;;  %p4204_p12 = scmp.lt.u32.totalorder %s4197_s22, %s5614_s9 }
  0x99   : > { %p4200_p3 = pnand %p4198_p1, %p4900_p8 }
  0x9b   : > { %p4201_p11 = pneg %p4200_p3 }
  0x9d   : > { %p4206_p13 = pnand %p4204_p12, %p4201_p11 }
  0x9f   : > { %4209 = shalt.err (!%p4206_p13)
}
  0xa0   : > { %s4210_s25 = scalar_lea.vmem %s597_s21, 16  ;;  %s4217_s0 = scalar_lea.vmem %s597_s21, 32 }
  0xa1   : > { %p4211_p0 = scmp.ne.s32.totalorder %s597_s21, %s4210_s25  ;;  %p4218_p7 = scmp.lt.s32.totalorder %s597_s21, %s597_s21 }
  0xa2   : > { %p4219_p9 = scmp.lt.s32.totalorder %s4217_s0, %s4210_s25 }
  0xa3   : > { %p4213_p2 = pnand %p4211_p0, %p4900_p8 }
  0xa4   : > { %p4220_p5 = por %p4219_p9, %p4218_p7 }
  0xa5   : > { %p4214_p4 = pneg %p4213_p2 }
  0xa7   : > { %p4221_p10 = pnand %p4220_p5, %p4214_p4 }
  0xa9   : > { %4224 = shalt.err (!%p4221_p10)
}
  0xaa   : > { %3925 = dma.hbm_to_vmem [thread:$0]  (!%p4884_p6), %s5614_s9, 16, %s597_s21, [#allocation18]  }
  0xab   : > { %s4718_s28 = smov [#allocation20]   ;;  %s4719_s19 = smov [#allocation23]  }
  0xac   : > { %s617_s29 = sshll.u32 %s4718_s28, 4  ;;  %s641_s22 = sshll.u32 %s4719_s19, 4  ;;  %s618_s29 = int_to_ptr.vmem [resolvable:$true] %s617_s29  ;;  %s642_s22 = int_to_ptr.vmem [resolvable:$true] %s641_s22 }
  0xad   : > { %s4225_s17 = scalar_lea.hbm %s5616_s11, 512 }
  0xae   : > { %p4226_p1 = scmp.ne.s32.totalorder %s5616_s11, %s4225_s17  ;;  %p4232_p12 = scmp.lt.u32.totalorder %s4225_s17, %s5616_s11 }
  0xb0   : > { %p4228_p3 = pnand %p4226_p1, %p4900_p8 }
  0xb2   : > { %p4229_p11 = pneg %p4228_p3 }
  0xb4   : > { %p4234_p13 = pnand %p4232_p12, %p4229_p11 }
  0xb6   : > { %4237 = shalt.err (!%p4234_p13)
}
  0xb7   : > { %s4238_s21 = scalar_lea.vmem %s618_s29, 512  ;;  %p4246_p7 = scmp.lt.s32.totalorder %s618_s29, %s618_s29 }
  0xb8   : > { %p4239_p0 = scmp.ne.s32.totalorder %s618_s29, %s4238_s21  ;;  %p4247_p9 = scmp.lt.s32.totalorder %s4238_s21, %s4238_s21 }
  0xba   : > { %p4241_p2 = pnand %p4239_p0, %p4900_p8  ;;  %p4248_p5 = por %p4247_p9, %p4246_p7 }
  0xbc   : > { %p4242_p4 = pneg %p4241_p2 }
  0xbe   : > { %p4249_p10 = pnand %p4248_p5, %p4242_p4 }
  0xc0   : > { %4252 = shalt.err (!%p4249_p10)
}
  0xc1   : > { %3931 = dma.hbm_to_vmem [thread:$0]  (!%p4884_p6), %s5616_s11, 512, %s618_s29, [#allocation21], %s4714_s27, %s4714_s27, %s4715_s30  }
  0xc2   : > { %s4253_s26 = scalar_lea.hbm %s5618_s13, 1024 }
  0xc3   : > { %p4254_p1 = scmp.ne.s32.totalorder %s5618_s13, %s4253_s26  ;;  %p4260_p12 = scmp.lt.u32.totalorder %s4253_s26, %s5618_s13 }
  0xc5   : > { %p4256_p3 = pnand %p4254_p1, %p4900_p8 }
  0xc7   : > { %p4257_p11 = pneg %p4256_p3 }
  0xc9   : > { %p4262_p13 = pnand %p4260_p12, %p4257_p11 }
  0xcb   : > { %4265 = shalt.err (!%p4262_p13)
}
  0xcc   : > { %s4266_s1 = scalar_lea.vmem %s642_s22, 1024  ;;  %p4274_p7 = scmp.lt.s32.totalorder %s642_s22, %s642_s22 }
  0xcd   : > { %p4267_p0 = scmp.ne.s32.totalorder %s642_s22, %s4266_s1  ;;  %p4275_p9 = scmp.lt.s32.totalorder %s4266_s1, %s4266_s1 }
  0xcf   : > { %p4269_p2 = pnand %p4267_p0, %p4900_p8  ;;  %p4276_p5 = por %p4275_p9, %p4274_p7 }
  0xd1   : > { %p4270_p4 = pneg %p4269_p2 }
  0xd3   : > { %p4277_p10 = pnand %p4276_p5, %p4270_p4 }
  0xd5   : > { %4280 = shalt.err (!%p4277_p10)
}
  0xd6   : > { %3937 = dma.hbm_to_vmem [thread:$0]  (!%p4884_p6), %s5618_s13, 1024, %s642_s22, [#allocation24], %s4714_s27, %s4714_s27, %s4715_s30  }
  0xd7   : > { %s4720_s3 = smov [#allocation26]   ;;  %s4721_s19 = smov [#allocation7]  }
  0xd8   : > { %s666_s28 = sshll.u32 %s4720_s3, 4  ;;  %s506_s24 = sshll.u32 %s4721_s19, 4  ;;  %s667_s28 = int_to_ptr.vmem [resolvable:$true] %s666_s28  ;;  %s507_s24 = int_to_ptr.vmem [resolvable:$true] %s506_s24 }
  0xd9   : > { %s4281_s2 = scalar_lea.hbm %s5620_s15, 16 }
  0xda   : > { %p4282_p1 = scmp.ne.s32.totalorder %s5620_s15, %s4281_s2  ;;  %p4288_p12 = scmp.lt.u32.totalorder %s4281_s2, %s5620_s15 }
  0xdc   : > { %p4284_p3 = pnand %p4282_p1, %p4900_p8 }
  0xde   : > { %p4285_p11 = pneg %p4284_p3 }
  0xe0   : > { %p4290_p13 = pnand %p4288_p12, %p4285_p11 }
  0xe2   : > { %4293 = shalt.err (!%p4290_p13)
}
  0xe3   : > { %s4294_s27 = scalar_lea.vmem %s667_s28, 16  ;;  %s4301_s30 = scalar_lea.vmem %s667_s28, 32 }
  0xe4   : > { %p4295_p0 = scmp.ne.s32.totalorder %s667_s28, %s4294_s27  ;;  %p4302_p7 = scmp.lt.s32.totalorder %s667_s28, %s667_s28 }
  0xe5   : > { %p4303_p9 = scmp.lt.s32.totalorder %s4301_s30, %s4294_s27 }
  0xe6   : > { %p4297_p2 = pnand %p4295_p0, %p4900_p8 }
  0xe7   : > { %p4304_p5 = por %p4303_p9, %p4302_p7 }
  0xe8   : > { %p4298_p4 = pneg %p4297_p2 }
  0xea   : > { %p4305_p10 = pnand %p4304_p5, %p4298_p4 }
  0xec   : > { %4308 = shalt.err (!%p4305_p10)
}
  0xed   : > { %3943 = dma.hbm_to_vmem [thread:$0]  (!%p4884_p6), %s5620_s15, 16, %s667_s28, [#allocation27]  }
  0xee   : > { %s5671_s26 = sld [smem:[#allocation53_spill]] }
  0xf4   : > { %s4309_s17 = scalar_lea.hbm %s5671_s26, 64 }
  0xf5   : > { %p4310_p1 = scmp.ne.s32.totalorder %s5671_s26, %s4309_s17  ;;  %p4316_p12 = scmp.lt.u32.totalorder %s4309_s17, %s5671_s26 }
  0xf7   : > { %p4312_p3 = pnand %p4310_p1, %p4900_p8 }
  0xf9   : > { %p4313_p11 = pneg %p4312_p3 }
  0xfb   : > { %p4318_p13 = pnand %p4316_p12, %p4313_p11 }
  0xfd   : > { %4321 = shalt.err (!%p4318_p13)
}
  0xfe   : > { %s4322_s29 = scalar_lea.vmem %s507_s24, 64  ;;  %p4330_p7 = scmp.lt.s32.totalorder %s507_s24, %s507_s24 }
  0xff   : > { %p4323_p0 = scmp.ne.s32.totalorder %s507_s24, %s4322_s29  ;;  %p4331_p9 = scmp.lt.s32.totalorder %s4322_s29, %s4322_s29 }
 0x101   : > { %p4325_p2 = pnand %p4323_p0, %p4900_p8  ;;  %p4332_p5 = por %p4331_p9, %p4330_p7 }
 0x103   : > { %p4326_p4 = pneg %p4325_p2 }
 0x105   : > { %p4333_p10 = pnand %p4332_p5, %p4326_p4 }
 0x107   : > { %4336 = shalt.err (!%p4333_p10)
}
 0x108   : > { %s4722_s28 = smov 16   ;;  %s4723_s27 = smov 1  }
 0x109   : > { %3904 = dma.hbm_to_vmem [thread:$0]  (!%p4884_p6), %s5671_s26, 64, %s507_s24, [#allocation6], %s4722_s28, %s4722_s28, %s4723_s27  }
 0x10a   : > { %s4724_s21 = smov [#allocation10]   ;;  %s4725_s19 = smov [#allocation13]  }
 0x10b   : > { %s532_s3 = sshll.u32 %s4724_s21, 4  ;;  %s558_s17 = sshll.u32 %s4725_s19, 4  ;;  %s533_s3 = int_to_ptr.vmem [resolvable:$true] %s532_s3  ;;  %s559_s17 = int_to_ptr.vmem [resolvable:$true] %s558_s17 }
 0x10c   : > { %s5672_s4 = sld [smem:[#allocation55_spill]] }
 0x112   : > { %s4337_s0 = scalar_lea.hbm %s5672_s4, 64 }
 0x113   : > { %p4338_p1 = scmp.ne.s32.totalorder %s5672_s4, %s4337_s0  ;;  %p4344_p12 = scmp.lt.u32.totalorder %s4337_s0, %s5672_s4 }
 0x115   : > { %p4340_p3 = pnand %p4338_p1, %p4900_p8 }
 0x117   : > { %p4341_p11 = pneg %p4340_p3 }
 0x119   : > { %p4346_p13 = pnand %p4344_p12, %p4341_p11 }
 0x11b   : > { %4349 = shalt.err (!%p4346_p13)
}
 0x11c   : > { %s4350_s24 = scalar_lea.vmem %s533_s3, 64  ;;  %p4358_p7 = scmp.lt.s32.totalorder %s533_s3, %s533_s3 }
 0x11d   : > { %p4351_p0 = scmp.ne.s32.totalorder %s533_s3, %s4350_s24  ;;  %p4359_p9 = scmp.lt.s32.totalorder %s4350_s24, %s4350_s24 }
 0x11f   : > { %p4353_p2 = pnand %p4351_p0, %p4900_p8  ;;  %p4360_p5 = por %p4359_p9, %p4358_p7 }
 0x121   : > { %p4354_p4 = pneg %p4353_p2 }
 0x123   : > { %p4361_p10 = pnand %p4360_p5, %p4354_p4 }
 0x125   : > { %4364 = shalt.err (!%p4361_p10)
}
 0x126   : > { %3910 = dma.hbm_to_vmem [thread:$0]  (!%p4884_p6), %s5672_s4, 64, %s533_s3, [#allocation9], %s4722_s28, %s4722_s28, %s4723_s27  }
 0x127   : > { %s5673_s6 = sld [smem:[#allocation57_spill]] }
 0x12d   : > { %s4365_s21 = scalar_lea.hbm %s5673_s6, 64 }
 0x12e   : > { %p4366_p1 = scmp.ne.s32.totalorder %s5673_s6, %s4365_s21  ;;  %p4372_p12 = scmp.lt.u32.totalorder %s4365_s21, %s5673_s6 }
 0x130   : > { %p4368_p3 = pnand %p4366_p1, %p4900_p8 }
 0x132   : > { %p4369_p11 = pneg %p4368_p3 }
 0x134   : > { %p4374_p13 = pnand %p4372_p12, %p4369_p11 }
 0x136   : > { %4377 = shalt.err (!%p4374_p13)
}
 0x137   : > { %s4378_s1 = scalar_lea.vmem %s559_s17, 64  ;;  %p4386_p7 = scmp.lt.s32.totalorder %s559_s17, %s559_s17 }
 0x138   : > { %p4379_p0 = scmp.ne.s32.totalorder %s559_s17, %s4378_s1  ;;  %p4387_p9 = scmp.lt.s32.totalorder %s4378_s1, %s4378_s1 }
 0x13a   : > { %p4381_p2 = pnand %p4379_p0, %p4900_p8  ;;  %p4388_p5 = por %p4387_p9, %p4386_p7 }
 0x13c   : > { %p4382_p4 = pneg %p4381_p2 }
 0x13e   : > { %p4389_p10 = pnand %p4388_p5, %p4382_p4 }
 0x140   : > { %4392 = shalt.err (!%p4389_p10)
}
 0x141   : > { %3916 = dma.hbm_to_vmem [thread:$0]  (!%p4884_p6), %s5673_s6, 64, %s559_s17, [#allocation12], %s4722_s28, %s4722_s28, %s4723_s27  }
 0x142   : > { %s4726_s24 = smov [#allocation16]   ;;  %s4727_s7 = smov [#allocation19]  }
 0x143   : > { %s585_s5 = sshll.u32 %s4726_s24, 4  ;;  %s607_s30 = sshll.u32 %s4727_s7, 4  ;;  %s586_s5 = int_to_ptr.vmem [resolvable:$true] %s585_s5  ;;  %s608_s30 = int_to_ptr.vmem [resolvable:$true] %s607_s30 }
 0x144   : > { %s4393_s19 = scalar_lea.hbm %s5613_s8, 16 }
 0x145   : > { %p4394_p1 = scmp.ne.s32.totalorder %s5613_s8, %s4393_s19  ;;  %p4400_p12 = scmp.lt.u32.totalorder %s4393_s19, %s5613_s8 }
 0x147   : > { %p4396_p3 = pnand %p4394_p1, %p4900_p8 }
 0x149   : > { %p4397_p11 = pneg %p4396_p3 }
 0x14b   : > { %p4402_p13 = pnand %p4400_p12, %p4397_p11 }
 0x14d   : > { %4405 = shalt.err (!%p4402_p13)
}
 0x14e   : > { %s4406_s28 = scalar_lea.vmem %s586_s5, 16  ;;  %s4413_s27 = scalar_lea.vmem %s586_s5, 32 }
 0x14f   : > { %p4407_p0 = scmp.ne.s32.totalorder %s586_s5, %s4406_s28  ;;  %p4414_p7 = scmp.lt.s32.totalorder %s586_s5, %s586_s5 }
 0x150   : > { %p4415_p9 = scmp.lt.s32.totalorder %s4413_s27, %s4406_s28 }
 0x151   : > { %p4409_p2 = pnand %p4407_p0, %p4900_p8 }
 0x152   : > { %p4416_p5 = por %p4415_p9, %p4414_p7 }
 0x153   : > { %p4410_p4 = pneg %p4409_p2 }
 0x155   : > { %p4417_p10 = pnand %p4416_p5, %p4410_p4 }
 0x157   : > { %4420 = shalt.err (!%p4417_p10)
}
 0x158   : > { %3922 = dma.hbm_to_vmem [thread:$0]  (!%p4884_p6), %s5613_s8, 16, %s586_s5, [#allocation15]  }
 0x159   : > { %s4421_s7 = scalar_lea.hbm %s5615_s10, 16 }
 0x15a   : > { %p4422_p1 = scmp.ne.s32.totalorder %s5615_s10, %s4421_s7  ;;  %p4428_p12 = scmp.lt.u32.totalorder %s4421_s7, %s5615_s10 }
 0x15c   : > { %p4424_p3 = pnand %p4422_p1, %p4900_p8 }
 0x15e   : > { %p4425_p11 = pneg %p4424_p3 }
 0x160   : > { %p4430_p13 = pnand %p4428_p12, %p4425_p11 }
 0x162   : > { %4433 = shalt.err (!%p4430_p13)
}
 0x163   : > { %s4434_s25 = scalar_lea.vmem %s608_s30, 16  ;;  %s4441_s5 = scalar_lea.vmem %s608_s30, 32 }
 0x164   : > { %p4435_p0 = scmp.ne.s32.totalorder %s608_s30, %s4434_s25  ;;  %p4442_p7 = scmp.lt.s32.totalorder %s608_s30, %s608_s30 }
 0x165   : > { %p4443_p9 = scmp.lt.s32.totalorder %s4441_s5, %s4434_s25 }
 0x166   : > { %p4437_p2 = pnand %p4435_p0, %p4900_p8 }
 0x167   : > { %p4444_p5 = por %p4443_p9, %p4442_p7 }
 0x168   : > { %p4438_p4 = pneg %p4437_p2 }
 0x16a   : > { %p4445_p10 = pnand %p4444_p5, %p4438_p4 }
 0x16c   : > { %4448 = shalt.err (!%p4445_p10)
}
 0x16d   : > { %3928 = dma.hbm_to_vmem [thread:$0]  (!%p4884_p6), %s5615_s10, 16, %s608_s30, [#allocation18]  }
 0x16e   : > { %s4728_s28 = smov [#allocation22]   ;;  %s4729_s17 = smov [#allocation25]  }
 0x16f   : > { %s631_s27 = sshll.u32 %s4728_s28, 4  ;;  %s655_s3 = sshll.u32 %s4729_s17, 4  ;;  %s632_s27 = int_to_ptr.vmem [resolvable:$true] %s631_s27  ;;  %s656_s3 = int_to_ptr.vmem [resolvable:$true] %s655_s3 }
 0x170   : > { %s4449_s7 = scalar_lea.hbm %s5617_s12, 16 }
 0x171   : > { %p4450_p1 = scmp.ne.s32.totalorder %s5617_s12, %s4449_s7  ;;  %p4456_p12 = scmp.lt.u32.totalorder %s4449_s7, %s5617_s12 }
 0x173   : > { %p4452_p3 = pnand %p4450_p1, %p4900_p8 }
 0x175   : > { %p4453_p11 = pneg %p4452_p3 }
 0x177   : > { %p4458_p13 = pnand %p4456_p12, %p4453_p11 }
 0x179   : > { %4461 = shalt.err (!%p4458_p13)
}
 0x17a   : > { %s4462_s30 = scalar_lea.vmem %s632_s27, 16  ;;  %s4469_s25 = scalar_lea.vmem %s632_s27, 32 }
 0x17b   : > { %p4463_p0 = scmp.ne.s32.totalorder %s632_s27, %s4462_s30  ;;  %p4470_p7 = scmp.lt.s32.totalorder %s632_s27, %s632_s27 }
 0x17c   : > { %p4471_p9 = scmp.lt.s32.totalorder %s4469_s25, %s4462_s30 }
 0x17d   : > { %p4465_p2 = pnand %p4463_p0, %p4900_p8 }
 0x17e   : > { %p4472_p5 = por %p4471_p9, %p4470_p7 }
 0x17f   : > { %p4466_p4 = pneg %p4465_p2 }
 0x181   : > { %p4473_p10 = pnand %p4472_p5, %p4466_p4 }
 0x183   : > { %4476 = shalt.err (!%p4473_p10)
}
 0x184   : > { %3934 = dma.hbm_to_vmem [thread:$0]  (!%p4884_p6), %s5617_s12, 16, %s632_s27, [#allocation21]  }
 0x185   : > { %s4477_s17 = scalar_lea.hbm %s5619_s14, 16 }
 0x186   : > { %p4478_p1 = scmp.ne.s32.totalorder %s5619_s14, %s4477_s17  ;;  %p4484_p12 = scmp.lt.u32.totalorder %s4477_s17, %s5619_s14 }
 0x188   : > { %p4480_p3 = pnand %p4478_p1, %p4900_p8 }
 0x18a   : > { %p4481_p11 = pneg %p4480_p3 }
 0x18c   : > { %p4486_p13 = pnand %p4484_p12, %p4481_p11 }
 0x18e   : > { %4489 = shalt.err (!%p4486_p13)
}
 0x18f   : > { %s4490_s21 = scalar_lea.vmem %s656_s3, 16  ;;  %s4497_s27 = scalar_lea.vmem %s656_s3, 32 }
 0x190   : > { %p4491_p0 = scmp.ne.s32.totalorder %s656_s3, %s4490_s21  ;;  %p4498_p7 = scmp.lt.s32.totalorder %s656_s3, %s656_s3 }
 0x191   : > { %p4499_p9 = scmp.lt.s32.totalorder %s4497_s27, %s4490_s21 }
 0x192   : > { %p4493_p2 = pnand %p4491_p0, %p4900_p8 }
 0x193   : > { %p4500_p5 = por %p4499_p9, %p4498_p7 }
 0x194   : > { %p4494_p4 = pneg %p4493_p2 }
 0x196   : > { %p4501_p10 = pnand %p4500_p5, %p4494_p4 }
 0x198   : > { %4504 = shalt.err (!%p4501_p10)
}
 0x199   : > { %3940 = dma.hbm_to_vmem [thread:$0]  (!%p4884_p6), %s5619_s14, 16, %s656_s3, [#allocation24]  }
 0x19a   : > { %s4730_s30 = smov [#allocation28]   ;;  %s4505_s1 = scalar_lea.hbm %s5621_s16, 16 }
 0x19b   : > { %s677_s25 = sshll.u32 %s4730_s30, 4  ;;  %p4506_p1 = scmp.ne.s32.totalorder %s5621_s16, %s4505_s1  ;;  %s678_s25 = int_to_ptr.vmem [resolvable:$true] %s677_s25 }
 0x19c   : > { %p4512_p12 = scmp.lt.u32.totalorder %s4505_s1, %s5621_s16 }
 0x19d   : > { %p4508_p3 = pnand %p4506_p1, %p4900_p8 }
 0x19f   : > { %p4509_p11 = pneg %p4508_p3 }
 0x1a1   : > { %p4514_p13 = pnand %p4512_p12, %p4509_p11 }
 0x1a3   : > { %4517 = shalt.err (!%p4514_p13)
}
 0x1a4   : > { %s4518_s3 = scalar_lea.vmem %s678_s25, 16  ;;  %s4525_s7 = scalar_lea.vmem %s678_s25, 32 }
 0x1a5   : > { %p4519_p0 = scmp.ne.s32.totalorder %s678_s25, %s4518_s3  ;;  %p4526_p7 = scmp.lt.s32.totalorder %s678_s25, %s678_s25 }
 0x1a6   : > { %p4527_p9 = scmp.lt.s32.totalorder %s4525_s7, %s4518_s3 }
 0x1a7   : > { %p4521_p2 = pnand %p4519_p0, %p4900_p8 }
 0x1a8   : > { %p4528_p5 = por %p4527_p9, %p4526_p7 }
 0x1a9   : > { %p4522_p4 = pneg %p4521_p2 }
 0x1ab   : > { %p4529_p10 = pnand %p4528_p5, %p4522_p4 }
 0x1ad   : > { %4532 = shalt.err (!%p4529_p10)
}
 0x1ae   : > { %s5674_s27 = sld [smem:[#allocation48_spill]]  ;;  %s5675_s19 = sld [smem:[#allocation47_spill]] }
 0x1af   : > { %s5676_s2 = sld [smem:[#allocation45_spill]]  ;;  %s5677_s30 = sld [smem:[#allocation44_spill]] }
 0x1b0   : > { %s5678_s20 = sld [smem:[#allocation43_spill]]  ;;  %s5679_s5 = sld [smem:[#allocation49_spill]] }
 0x1b1   : > { %3946 = dma.hbm_to_vmem [thread:$0]  (!%p4884_p6), %s5621_s16, 16, %s678_s25, [#allocation27]  }
 0x1b4   : > { %s3320_s0 = sadd.s32 4294967294, %s5674_s27   ;;  %s58_s1 = sadd.s32 1, %s5675_s19 }
 0x1b5   : > { %p60_p8 = scmp.ge.s32.totalorder %s58_s1, 2  ;;  %s65_s23 = sadd.s32 1, %s5676_s2 }
 0x1b6   : > { %p72_p1 = scmp.ne.s32.totalorder %s5676_s2, %s5677_s30  ;;  %p73_p3 = scmp.eq.s32.totalorder %s5674_s27, 0 }
 0x1b7   : > { %s5709_s1 = smov (%p60_p8, %s58_s1), 0  ;;  %p78_p12 = scmp.ne.s32.totalorder %s5677_s30, %s5678_s20 }
 0x1b8   : > { %p5232_p11 = por %p73_p3, %p72_p1  ;;  %s62_s25 = ssub.s32 %s5675_s19, %s5709_s1 }
 0x1b9   : > { %s5681_s17 = sadd.s32 4294967295, %s5674_s27   ;;  %p63_p13 = scmp.eq.s32.totalorder %s62_s25, 0 }
 0x1ba   : > { %p440_p6 = scmp.eq.s32.totalorder %s5681_s17, 1  ;;  %p5682_p0 = scmp.ne.s32.totalorder %s5679_s5, 0 }
 0x1bb   : > { %p446_p7 = scmp.eq.s32.totalorder %s3320_s0, 1  ;;  %p3974_p5 = scmp.lt.s32.totalorder %s5674_s27, 2 }
 0x1bc   : > { %p5244_p2 = por %p5682_p0, %p78_p12  ;;  %p5248_p4 = por %p440_p6, %p72_p1 }
 0x1bd   : > { %s5253_s3 = scalar_select %p63_p13, %s5676_s2, %s65_s23  }
 0x1be   : > { %s5684_s24 = scalar_select %p5248_p4, 1, 0 }
 0x1bf   : > { %p5255_p9 = por %p446_p7, %p78_p12  ;;  %s688_s22 = sand.u32 1, %s5676_s2  }
 0x1c0   : > { %s3340_s21 = sshll.u32 %s5675_s19, 7  ;;  %s3339_s30 = sshll.u32 %s688_s22, 3 }
 0x1c1   : > { %s5685_s7 = scalar_select %p5255_p9, 1, 0 }
 0x1c2   : > { %s5686_s25 = sld [smem:[#allocation51_spill]]  ;;  %s692_s0 = scalar_lea.vmem [#allocation2], %s3339_s30 }
 0x1c3   : > { %s699_s23 = sshll.u32 %s692_s0, 4  ;;  %p5269_p10 = pnand %p3974_p5, %p5232_p11  ;;  %s5273_s23 = int_to_ptr.vmem [resolvable:$true] %s699_s23 }
 0x1c4   : > { %s689_s27 = scalar_lea.sflag [#allocation3], %s688_s22 }
 0x1c5   : > { %p4535_p1 = pneg %p5269_p10 }
 0x1c8   : > { %s5265_s17 = scalar_lea.hbm %s5686_s25, %s3340_s21  ;;  %s4538_s28 = scalar_lea.hbm %s5686_s25, 256 }
 0x1c9   : > { %s4533_s19 = scalar_lea.hbm %s5265_s17, 128  ;;  %p4539_p11 = scmp.lt.u32.totalorder %s5265_s17, %s5686_s25 }
 0x1ca   : > { %p4534_p8 = scmp.ne.s32.totalorder %s5265_s17, %s4533_s19  ;;  %p4540_p6 = scmp.lt.u32.totalorder %s4538_s28, %s4533_s19 }
 0x1cb   : > { %p4542_p0 = scmp.lt.u32.totalorder %s4533_s19, %s5265_s17 }
 0x1cc   : > { %p4536_p3 = pnand %p4535_p1, %p4534_p8  ;;  %p4541_p13 = por %p4540_p6, %p4539_p11 }
 0x1ce   : > { %p4537_p12 = pneg %p4536_p3  ;;  %p4543_p7 = por %p4542_p0, %p4541_p13 }
 0x1d0   : > { %p4544_p5 = pnand %p4543_p7, %p4537_p12 }
 0x1d2   : > { %4547 = shalt.err (!%p4544_p5)
}
 0x1d3   : > { %s4548_s22 = scalar_lea.vmem %s5273_s23, 128  ;;  %s4731_s5 = smov [#allocation2]  }
 0x1d4   : > { %p4549_p8 = scmp.ne.s32.totalorder %s5273_s23, %s4548_s22  ;;  %s4553_s0 = sshll.u32 %s4731_s5, 4  ;;  %s4554_s0 = int_to_ptr.vmem [resolvable:$false] %s4553_s0 }
 0x1d5   : > { %s4555_s2 = scalar_lea.vmem %s4554_s0, 256  ;;  %p4556_p4 = scmp.lt.s32.totalorder %s5273_s23, %s4554_s0 }
 0x1d6   : > { %p4551_p3 = pnand %p4549_p8, %p4535_p1  ;;  %p4557_p11 = scmp.lt.s32.totalorder %s4555_s2, %s4548_s22 }
 0x1d8   : > { %p4552_p9 = pneg %p4551_p3  ;;  %p4558_p6 = por %p4557_p11, %p4556_p4 }
 0x1da   : > { %p4559_p13 = pnand %p4558_p6, %p4552_p9 }
 0x1dc   : > { %4562 = shalt.err (!%p4559_p13)
}
 0x1dd   : > { %3950 = dma.hbm_to_vmem [thread:$0]  (!%p5269_p10), %s5265_s17, 128, %s5273_s23, %s689_s27  }
 0x1de   : > { %s5688_s19 = sld [smem:[#allocation50_spill]] }
 0x1e4   : > { %p5689_p12 = scmp.ne.s32.totalorder %s5688_s19, 0 }
 0x1e5   : > { %s5690_s21 = sld [smem:[#allocation44_spill]] (!%p5689_p12) }
 0x1e6   : > { %708 = sbr.rel (%p5689_p12) target bundleno = 2803 (0xaf3), region = 88 }
 0x1eb   : > { %s5303_s28 = sand.u32 (!%p5689_p12), 1, %s5690_s21  }
 0x1ec   : > { %s5644_s30 = sshll.u32 (!%p5689_p12), %s5303_s28, 3  ;;  %s711_s20 = scalar_lea.sflag (!%p5689_p12), [#allocation3], %s5303_s28 }
 0x1ed   : > { %s5309_s22 = scalar_lea.vmem [#allocation2], %s5644_s30 }
 0x1ee   : > { %4644 = dma.done.wait (%p5244_p2), %s711_s20, 128  }
 0x1ef   : > { %4646 = vsyncadd (%p5244_p2), %s711_s20, 4294967168  ;;  %s5691_s4 = sld [smem:[#allocation49_spill]] }
 0x1f5   : > { %p5692_p4 = scmp.ne.s32.totalorder %s5691_s4, 0 }
 0x1f7   : > { %4648 = dma.done.wait (%p5692_p4), [#allocation6], 2112  }
 0x1f8   : > { %4650 = vsyncadd (%p5692_p4), [#allocation6], 4294965184 }
 0x1f9   : > { %4652 = dma.done.wait (%p5692_p4), [#allocation9], 2112  }
 0x1fa   : > { %4654 = vsyncadd (%p5692_p4), [#allocation9], 4294965184 }
 0x1fb   : > { %4656 = dma.done.wait (%p5692_p4), [#allocation12], 2112  }
 0x1fc   : > { %4658 = vsyncadd (%p5692_p4), [#allocation12], 4294965184 }
 0x1fd   : > { %4660 = dma.done.wait (%p5692_p4), [#allocation15], 528  }
 0x1fe   : > { %4662 = vsyncadd (%p5692_p4), [#allocation15], 4294966768 }
 0x1ff   : > { %4664 = dma.done.wait (%p5692_p4), [#allocation18], 32  }
 0x200   : > { %4666 = vsyncadd (%p5692_p4), [#allocation18], 4294967264 }
 0x201   : > { %4668 = dma.done.wait (%p5692_p4), [#allocation21], 528  }
 0x202   : > { %4670 = vsyncadd (%p5692_p4), [#allocation21], 4294966768 }
 0x203   : > { %4672 = dma.done.wait (%p5692_p4), [#allocation24], 1040  }
 0x204   : > { %4674 = vsyncadd (%p5692_p4), [#allocation24], 4294966256 }
 0x205   : > { %4676 = dma.done.wait (%p5692_p4), [#allocation27], 32  }
 0x206   : > { %4678 = vsyncadd (%p5692_p4), [#allocation27], 4294967264  ;;  %v4732_v0 = vmov 0.0|0.0   ;;  %vm4733_vm0 = vmmov 0   ;;  %v4734_v1 = vmov 0.0   ;;  %v840_v2 = vld [vmem:[#allocation5] sm:$0xff] }
 0x207   : > { %3738 = vmatprep.subr.bf16.mxu0 %v4732_v0  ;;  %3744 = vmatprep.subr.bf16.mxu1 %v4732_v0  ;;  %v841_v3 = vld [vmem:[#allocation5 + $0x8] sm:$0xff]  ;;  %v844_v4 = vld [vmem:[#allocation5 + $0x20] sm:$0xff]  ;;  %v842_v7 = vld [vmem:[#allocation5 + $0x10] sm:$0xff]  ;;  %vm884_vm1 = vcmask 261120   ;;  %vm1823_vm2 = vcmask 64512   ;;  %s3360_s29 = sshll.u32 %s5303_s28, 5 }
 0x208   : > { %3524 = vmatprep.mubr.msk.f32.mxu0 %vm4733_vm0, %v4734_v1  ;;  %3535 = vmatprep.mubr.msk.f32.mxu1 %vm4733_vm0, %v4734_v1  ;;  %v3739_v5 = vpack.c.bf16 %v841_v3, %v840_v2  ;;  %v845_v6 = vld [vmem:[#allocation5 + $0x28] sm:$0xff]  ;;  %v843_v8 = vld [vmem:[#allocation5 + $0x18] sm:$0xff]  ;;  %v846_v10 = vld [vmem:[#allocation5 + $0x30] sm:$0xff]  ;;  %s5461_s17 = scalar_lea.vmem [#allocation30], %s3360_s29  ;;  %vm2910_vm3 = vcmask 523264   ;;  %s5693_s23 = sld [smem:[#allocation46_spill]] }
 0x209   : > { %v3745_v9 = vpack.c.bf16 %v845_v6, %v844_v4  ;;  %v847_v11 = vld [vmem:[#allocation5 + $0x38] sm:$0xff]  ;;  %v3742_v12 = vpack.c.bf16 %v843_v8, %v842_v7  ;;  %v848_v14 = vld [vmem:[#allocation5 + $0x40] sm:$0xff]  ;;  %v849_v15 = vld [vmem:[#allocation5 + $0x48] sm:$0xff]  ;;  %s3049_s5 = sshll.u32 %s5461_s17, 4  ;;  %s5694_s19 = sld [smem:[#allocation60_spill]]  ;;  %s5523_s5 = int_to_ptr.vmem [resolvable:$true] %s3049_s5 }
 0x20a   : > { %3740 = vmatpush3.bf16.msra.mxu0 %v3739_v5  ;;  %v3748_v13 = vpack.c.bf16 %v847_v11, %v846_v10  ;;  %v852_v16 = vld [vmem:[#allocation5 + $0x60] sm:$0xff]  ;;  %v853_v17 = vld [vmem:[#allocation5 + $0x68] sm:$0xff]  ;;  %v5356_v18 = vld [vmem:[%s5309_s22] sm:$0xff]  ;;  %v3751_v19 = vpack.c.bf16 %v849_v15, %v848_v14  ;;  %s3021_s22 = scalar_lea.sflag [#allocation31], %s5303_s28  ;;  %s4563_s4 = scalar_lea.vmem %s5523_s5, 512 }
 0x20b   : > { %3746 = vmatpush3.bf16.msra.mxu1 %v3745_v9  ;;  %3741 = vmatprep.subr.bf16.mxu0 %v4732_v0  ;;  %v3757_v20 = vpack.c.bf16 %v853_v17, %v852_v16  ;;  %v850_v21 = vld [vmem:[#allocation5 + $0x50] sm:$0xff]  ;;  %v851_v22 = vld [vmem:[#allocation5 + $0x58] sm:$0xff]  ;;  %v1168_v27 = vld [vmem:[#allocation8] sm:$0xff]  ;;  %p4564_p2 = scmp.ne.s32.totalorder %s5523_s5, %s4563_s4  ;;  %p5696_p9 = scmp.ne.s32.totalorder %s5684_s24, 0 }
 0x20c   : > { %3747 = vmatprep.subr.bf16.mxu1 %v4732_v0  ;;  %v854_v23 = vld [vmem:[#allocation5 + $0x70] sm:$0xff]  ;;  %v855_v24 = vld [vmem:[#allocation5 + $0x78] sm:$0xff]  ;;  %v3754_v25 = vpack.c.bf16 %v851_v22, %v850_v21  ;;  %v1172_v29 = vld [vmem:[#allocation8 + $0x20] sm:$0xff]  ;;  %s4735_s29 = smov [#allocation30]  }
 0x20d   : > { %v3760_v26 = vpack.c.bf16 %v855_v24, %v854_v23  ;;  %v1169_v28 = vld [vmem:[#allocation8 + $0x8] sm:$0xff]  ;;  %v1170_v33 = vld [vmem:[#allocation8 + $0x10] sm:$0xff]  ;;  %v1171_v34 = vld [vmem:[#allocation8 + $0x18] sm:$0xff]  ;;  %p4565_p10 = pnand %p4564_p2, %p5696_p9  ;;  %s4567_s30 = sshll.u32 %s4735_s29, 4  ;;  %s4568_s30 = int_to_ptr.vmem [resolvable:$false] %s4567_s30 }
 0x20e   : > { %3743 = vmatpush3.bf16.msra.mxu0 %v3742_v12  ;;  %v1173_v30 = vld [vmem:[#allocation8 + $0x28] sm:$0xff]  ;;  %v3763_v31 = vpack.c.bf16 %v1169_v28, %v1168_v27  ;;  %v1174_v35 = vld [vmem:[#allocation8 + $0x30] sm:$0xff]  ;;  %v1175_v36 = vld [vmem:[#allocation8 + $0x38] sm:$0xff]  ;;  %v3766_v37 = vpack.c.bf16 %v1171_v34, %v1170_v33  ;;  %s3417_s27 = sshll.u32 %s5693_s23, 9  ;;  %p4570_p0 = scmp.lt.s32.totalorder %s5523_s5, %s4568_s30 }
 0x20f   : > { %3749 = vmatpush3.bf16.msra.mxu1 %v3748_v13  ;;  %3750 = vmatprep.subr.bf16.mxu0 %v4732_v0  ;;  %v3769_v32 = vpack.c.bf16 %v1173_v30, %v1172_v29  ;;  %v3772_v38 = vpack.c.bf16 %v1175_v36, %v1174_v35  ;;  %v1176_v39 = vld [vmem:[#allocation8 + $0x40] sm:$0xff]  ;;  %v1177_v40 = vld [vmem:[#allocation8 + $0x48] sm:$0xff]  ;;  %v1178_v45 = vld [vmem:[#allocation8 + $0x50] sm:$0xff]  ;;  %s5695_s21 = smov %s5694_s19  ;;  %s5521_s20 = scalar_lea.hbm %s5694_s19, %s3417_s27 }
 0x210   : > { %3756 = vmatprep.subr.bf16.mxu1 %v4732_v0  ;;  %v1180_v41 = vld [vmem:[#allocation8 + $0x60] sm:$0xff]  ;;  %v1181_v42 = vld [vmem:[#allocation8 + $0x68] sm:$0xff]  ;;  %v3775_v43 = vpack.c.bf16 %v1177_v40, %v1176_v39  ;;  %v1179_v46 = vld [vmem:[#allocation8 + $0x58] sm:$0xff]  ;;  %p4566_p1 = pneg %p4565_p10 }
 0x211   : > { %3525 = vmatmul.mubr.msk.f32.vlgmr.msra.gmra.mrb[0].mxu0 %vm884_vm1, %v5356_v18  ;;  %v3781_v44 = vpack.c.bf16 %v1181_v42, %v1180_v41  ;;  %v1182_v47 = vld [vmem:[#allocation8 + $0x70] sm:$0xff]  ;;  %v1183_v48 = vld [vmem:[#allocation8 + $0x78] sm:$0xff]  ;;  %v3778_v49 = vpack.c.bf16 %v1179_v46, %v1178_v45  ;;  %v1495_v51 = vld [vmem:[#allocation11] sm:$0xff] }
 0x212   : > { %3536 = vmatmul.mubr.msk.f32.vlgmr.msra.gmra.mrb[0].mxu1 %vm884_vm1, %v5356_v18  ;;  %3752 = vmatpush3.bf16.msra.mxu0 %v3751_v19  ;;  %v3784_v50 = vpack.c.bf16 %v1183_v48, %v1182_v47  ;;  %v1496_v52 = vld [vmem:[#allocation11 + $0x8] sm:$0xff]  ;;  %v1497_v54 = vld [vmem:[#allocation11 + $0x10] sm:$0xff]  ;;  %v1498_v55 = vld [vmem:[#allocation11 + $0x18] sm:$0xff] }
 0x213   : > { %3758 = vmatpush3.bf16.msra.mxu1 %v3757_v20  ;;  %3753 = vmatprep.subr.bf16.mxu0 %v4732_v0  ;;  %v3787_v53 = vpack.c.bf16 %v1496_v52, %v1495_v51  ;;  %v3790_v56 = vpack.c.bf16 %v1498_v55, %v1497_v54  ;;  %v1499_v57 = vld [vmem:[#allocation11 + $0x20] sm:$0xff]  ;;  %v1500_v58 = vld [vmem:[#allocation11 + $0x28] sm:$0xff]  ;;  %v1501_v63 = vld [vmem:[#allocation11 + $0x30] sm:$0xff] }
 0x214   : > { %3759 = vmatprep.subr.bf16.mxu1 %v4732_v0  ;;  %3546 = vmatprep.mubr.msk.f32.mxu0 %vm4733_vm0, %v4734_v1  ;;  %v1503_v59 = vld [vmem:[#allocation11 + $0x40] sm:$0xff]  ;;  %v3793_v60 = vpack.c.bf16 %v1500_v58, %v1499_v57  ;;  %v1504_v61 = vld [vmem:[#allocation11 + $0x48] sm:$0xff]  ;;  %v1502_v2 = vld [vmem:[#allocation11 + $0x38] sm:$0xff] }
 0x215   : > { %3557 = vmatprep.mubr.msk.f32.mxu1 %vm4733_vm0, %v4734_v1  ;;  %v3799_v62 = vpack.c.bf16 %v1504_v61, %v1503_v59  ;;  %v1505_v3 = vld [vmem:[#allocation11 + $0x50] sm:$0xff]  ;;  %v3796_v4 = vpack.c.bf16 %v1502_v2, %v1501_v63  ;;  %v1506_v5 = vld [vmem:[#allocation11 + $0x58] sm:$0xff]  ;;  %v1507_v7 = vld [vmem:[#allocation11 + $0x60] sm:$0xff] }
 0x216   : > { %3755 = vmatpush3.bf16.msra.mxu0 %v3754_v25  ;;  %v3802_v6 = vpack.c.bf16 %v1506_v5, %v1505_v3  ;;  %v1508_v8 = vld [vmem:[#allocation11 + $0x68] sm:$0xff]  ;;  %v1509_v10 = vld [vmem:[#allocation11 + $0x70] sm:$0xff]  ;;  %v1510_v11 = vld [vmem:[#allocation11 + $0x78] sm:$0xff] }
 0x217   : > { %3761 = vmatpush3.bf16.msra.mxu1 %v3760_v26  ;;  %3762 = vmatprep.subr.bf16.mxu0 %v4732_v0  ;;  %v3805_v9 = vpack.c.bf16 %v1508_v8, %v1507_v7  ;;  %v3808_v12 = vpack.c.bf16 %v1510_v11, %v1509_v10  ;;  %v3361_v22 = vld [vmem:[#allocation7] ss:$0 sm:$0xff]  ;;  %v3369_v23 = vld [vmem:[#allocation10] ss:$0 sm:$0xff]  ;;  %v3370_v26 = vld [vmem:[#allocation10 + $0x1] ss:$0 sm:$0xff] }
 0x218   : > { %3768 = vmatprep.subr.bf16.mxu1 %v4732_v0  ;;  %v3362_v27 = vld [vmem:[#allocation7 + $0x1] ss:$0 sm:$0xff]  ;;  %v3363_v35 = vld [vmem:[#allocation7 + $0x2] ss:$0 sm:$0xff]  ;;  %v3364_v36 = vld [vmem:[#allocation7 + $0x3] ss:$0 sm:$0xff] }
 0x219   : > { %3547 = vmatmul.mubr.msk.f32.vlgmr.msra.gmra.mrb[2].mxu0 %vm884_vm1, %v5356_v18  ;;  %v3378_v54 = vld [vmem:[#allocation13 + $0x1] ss:$0 sm:$0xff] }
 0x21a   : > { %3558 = vmatmul.mubr.msk.f32.vlgmr.msra.gmra.mrb[2].mxu1 %vm884_vm1, %v5356_v18  ;;  %3764 = vmatpush3.bf16.msra.mxu0 %v3763_v31 }
 0x21b   : > { %3770 = vmatpush3.bf16.msra.mxu1 %v3769_v32  ;;  %3765 = vmatprep.subr.bf16.mxu0 %v4732_v0 }
 0x21c   : > { %3771 = vmatprep.subr.bf16.mxu1 %v4732_v0  ;;  %3568 = vmatprep.mubr.msk.f32.mxu0 %vm4733_vm0, %v4734_v1 }
 0x21d   : > { %3579 = vmatprep.mubr.msk.f32.mxu1 %vm4733_vm0, %v4734_v1 }
 0x21e   : > { %3767 = vmatpush3.bf16.msra.mxu0 %v3766_v37  ;;  %v3371_v37 = vld [vmem:[#allocation10 + $0x2] ss:$0 sm:$0xff] }
 0x21f   : > { %3773 = vmatpush3.bf16.msra.mxu1 %v3772_v38  ;;  %3774 = vmatprep.subr.bf16.mxu0 %v4732_v0  ;;  %v3372_v38 = vld [vmem:[#allocation10 + $0x3] ss:$0 sm:$0xff] }
 0x220   : > { %3780 = vmatprep.subr.bf16.mxu1 %v4732_v0 }
 0x221   : > { %3569 = vmatmul.mubr.msk.f32.vlgmr.msra.gmra.mrb[4].mxu0 %vm884_vm1, %v5356_v18 }
 0x222   : > { %3580 = vmatmul.mubr.msk.f32.vlgmr.msra.gmra.mrb[4].mxu1 %vm884_vm1, %v5356_v18  ;;  %3776 = vmatpush3.bf16.msra.mxu0 %v3775_v43 }
 0x223   : > { %3782 = vmatpush3.bf16.msra.mxu1 %v3781_v44  ;;  %3777 = vmatprep.subr.bf16.mxu0 %v4732_v0 }
 0x224   : > { %3783 = vmatprep.subr.bf16.mxu1 %v4732_v0  ;;  %3590 = vmatprep.mubr.msk.f32.mxu0 %vm4733_vm0, %v4734_v1 }
 0x225   : > { %3601 = vmatprep.mubr.msk.f32.mxu1 %vm4733_vm0, %v4734_v1 }
 0x226   : > { %3779 = vmatpush3.bf16.msra.mxu0 %v3778_v49 }
 0x227   : > { %3785 = vmatpush3.bf16.msra.mxu1 %v3784_v50  ;;  %3786 = vmatprep.subr.bf16.mxu0 %v4732_v0  ;;  %v3377_v50 = vld [vmem:[#allocation13] ss:$0 sm:$0xff] }
 0x228   : > { %3792 = vmatprep.subr.bf16.mxu1 %v4732_v0 }
 0x229   : > { %3591 = vmatmul.mubr.msk.f32.vlgmr.msra.gmra.mrb[6].mxu0 %vm884_vm1, %v5356_v18 }
 0x22a   : > { %3602 = vmatmul.mubr.msk.f32.vlgmr.msra.gmra.mrb[6].mxu1 %vm884_vm1, %v5356_v18  ;;  %3788 = vmatpush3.bf16.msra.mxu0 %v3787_v53 }
 0x22b   : > { %3789 = vmatprep.subr.bf16.mxu0 %v4732_v0  ;;  %3612 = vmatprep.mubr.msk.f32.mxu0 %vm4733_vm0, %v4734_v1 }
 0x22c   : > { %3623 = vmatprep.mubr.msk.f32.mxu1 %vm4733_vm0, %v4734_v1  ;;  %3794 = vmatpush3.bf16.msra.mxu1 %v3793_v60 }
 0x22d   : > { %3795 = vmatprep.subr.bf16.mxu1 %v4732_v0 }
 0x22e   : > { %3791 = vmatpush3.bf16.msra.mxu0 %v3790_v56 }
 0x22f   : > { %3798 = vmatprep.subr.bf16.mxu0 %v4732_v0 }
 0x230   : > { %3797 = vmatpush3.bf16.msra.mxu1 %v3796_v4 }
 0x231   : > { %3613 = vmatmul.mubr.msk.f32.vlgmr.msra.gmra.mrb[8].mxu0 %vm884_vm1, %v5356_v18  ;;  %3804 = vmatprep.subr.bf16.mxu1 %v4732_v0 }
 0x232   : > { %3634 = vmatprep.mubr.msk.f32.mxu0 %vm4733_vm0, %v4734_v1  ;;  %3800 = vmatpush3.bf16.msra.mxu0 %v3799_v62 }
 0x233   : > { %3801 = vmatprep.subr.bf16.mxu0 %v4732_v0  ;;  %3624 = vmatmul.mubr.msk.f32.vlgmr.msra.gmra.mrb[8].mxu1 %vm884_vm1, %v5356_v18 }
 0x234   : > { %3806 = vmatpush3.bf16.msra.mxu1 %v3805_v9  ;;  %3645 = vmatprep.mubr.msk.f32.mxu1 %vm4733_vm0, %v4734_v1 }
 0x235   : > { %3807 = vmatprep.subr.bf16.mxu1 %v4732_v0 }
 0x236   : > { %3803 = vmatpush3.bf16.msra.mxu0 %v3802_v6 }
 0x237   : > { %3648 = vmatprep.subr.mxu0 %v4734_v1 }
 0x238   : > { %3809 = vmatpush3.bf16.msra.mxu1 %v3808_v12 }
 0x239   : > { %3635 = vmatmul.mubr.msk.f32.vlgmr.msra.gmra.mrb[10].mxu0 %vm884_vm1, %v5356_v18  ;;  %3663 = vmatprep.subr.mxu1 %v4734_v1 }
 0x23a   : > { %3650 = vmatprep.mubr.msk.f32.mxu0 %vm4733_vm0, %v4734_v1 }
 0x23b   : > { %3646 = vmatmul.mubr.msk.f32.vlgmr.msra.gmra.mrb[10].mxu1 %vm884_vm1, %v5356_v18 }
 0x23c   : > { %3665 = vmatprep.mubr.msk.f32.mxu1 %vm4733_vm0, %v4734_v1 }
 0x2e4   : > { %v954_v13 = vpop.f32.mrb[0].mxu0 }
 0x2e5   : > { %v3526_v14 = vpop.f32.mrb[1].mxu0  ;;  %v1024_v15 = vpop.f32.mrb[0].mxu1  ;;  %v955_v24 = vadd.f32 %v3361_v22, %v954_v13 }
 0x2e6   : > { %v3537_v16 = vpop.f32.mrb[1].mxu1  ;;  %v1025_v34 = vadd.f32 %v3362_v27, %v1024_v15 }
 0x2e7   : > { %v1819_v33 = vmul.f32 0.35355338, %v955_v24 }
 0x2e8   : > { %v1820_v39 = vmul.f32 0.35355338, %v1025_v34 }
 0x2ec   : > { %v1094_v17 = vpop.f32.mrb[2].mxu0 }
 0x2ed   : > { %v3548_v19 = vpop.f32.mrb[3].mxu0  ;;  %v1164_v20 = vpop.f32.mrb[2].mxu1  ;;  %v1095_v40 = vadd.f32 %v3363_v35, %v1094_v17 }
 0x2ee   : > { %v3559_v21 = vpop.f32.mrb[3].mxu1  ;;  %v1165_v42 = vadd.f32 %v3364_v36, %v1164_v20  ;;  %v3379_v36 = vld [vmem:[#allocation13 + $0x2] ss:$0 sm:$0xff] }
 0x2ef   : > { %v1821_v48 = vmul.f32 0.35355338, %v1095_v40 }
 0x2f0   : > { %v1822_v49 = vmul.f32 0.35355338, %v1165_v42 }
 0x2f4   : > { %v1281_v25 = vpop.f32.mrb[4].mxu0 }
 0x2f5   : > { %v1282_v28 = vadd.f32 %v3369_v23, %v1281_v25  ;;  %v3570_v29 = vpop.f32.mrb[5].mxu0  ;;  %v1351_v30 = vpop.f32.mrb[4].mxu1 }
 0x2f6   : > { %v3581_v31 = vpop.f32.mrb[5].mxu1  ;;  %v1352_v32 = vadd.f32 %v3370_v26, %v1351_v30 }
 0x2f7   : > { %3649 = vmatpush3.xpose.msk.msra.mxu0 %vm1823_vm2, %v1282_v28 }
 0x2f8   : > { %3653 = vmatprep.subr.mxu0 %v4734_v1 }
 0x2fa   : > { %3651 = vmatmul.mubr.msk.f32.vlgmr.msra.gmra.mrb[12].mxu0 %vm1823_vm2, %v1819_v33 }
 0x2fb   : > { %3654 = vmatpush3.xpose.msk.msra.mxu0 %vm1823_vm2, %v1352_v32  ;;  %3655 = vmatprep.mubr.msk.f32.mxu0 %vm4733_vm0, %v4734_v1 }
 0x2fc   : > { %v1421_v41 = vpop.f32.mrb[6].mxu0  ;;  %3658 = vmatprep.subr.mxu0 %v4734_v1 }
 0x2fd   : > { %v1422_v43 = vadd.f32 %v3371_v37, %v1421_v41  ;;  %v1491_v44 = vpop.f32.mrb[6].mxu1  ;;  %v3592_v45 = vpop.f32.mrb[7].mxu0  ;;  %v3380_v41 = vld [vmem:[#allocation13 + $0x3] ss:$0 sm:$0xff] }
 0x2fe   : > { %v1492_v46 = vadd.f32 %v3372_v38, %v1491_v44  ;;  %3656 = vmatmul.mubr.msk.f32.vlgmr.msra.gmra.mrb[14].mxu0 %vm1823_vm2, %v1820_v39  ;;  %v3603_v47 = vpop.f32.mrb[7].mxu1 }
 0x2ff   : > { %3659 = vmatpush3.xpose.msk.msra.mxu0 %vm1823_vm2, %v1422_v43  ;;  %3660 = vmatprep.mubr.msk.f32.mxu0 %vm4733_vm0, %v4734_v1 }
 0x300   : > { %3664 = vmatpush3.xpose.msk.msra.mxu1 %vm1823_vm2, %v1492_v46  ;;  %3668 = vmatprep.subr.mxu0 %v4734_v1 }
 0x301   : > { %3673 = vmatprep.subr.mxu1 %v4734_v1 }
 0x302   : > { %3661 = vmatmul.mubr.msk.f32.vlgmr.msra.gmra.mrb[16].mxu0 %vm1823_vm2, %v1821_v48 }
 0x303   : > { %3666 = vmatmul.mubr.msk.f32.vlgmr.msra.gmra.mrb[12].mxu1 %vm1823_vm2, %v1822_v49  ;;  %3670 = vmatprep.mubr.msk.f32.mxu0 %vm4733_vm0, %v4734_v1  ;;  %v2468_v49 = vld [vmem:[#allocation14] sm:$0xff] }
 0x304   : > { %3675 = vmatprep.mubr.msk.f32.mxu1 %vm4733_vm0, %v4734_v1  ;;  %v1605_v51 = vpop.f32.mrb[8].mxu0 }
 0x305   : > { %v1606_v52 = vadd.f32 %v3377_v50, %v1605_v51  ;;  %v3614_v53 = vpop.f32.mrb[9].mxu0  ;;  %v2469_v50 = vld [vmem:[#allocation14 + $0x8] sm:$0xff]  ;;  %v2470_v51 = vld [vmem:[#allocation14 + $0x10] sm:$0xff] }
 0x306   : > { %v1675_v55 = vpop.f32.mrb[8].mxu1 }
 0x307   : > { %3669 = vmatpush3.msra.mxu0 %v1606_v52  ;;  %v1676_v56 = vadd.f32 %v3378_v54, %v1675_v55  ;;  %v3625_v57 = vpop.f32.mrb[9].mxu1  ;;  %v2471_v54 = vld [vmem:[#allocation14 + $0x18] sm:$0xff] }
 0x308   : > { %3678 = vmatprep.subr.mxu0 %v4734_v1 }
 0x309   : > { %3674 = vmatpush3.msra.mxu1 %v1676_v56 }
 0x30a   : > { %3683 = vmatprep.subr.mxu1 %v4734_v1 }
 0x30c   : > { %v1745_v58 = vpop.f32.mrb[10].mxu0 }
 0x30d   : > { %v3636_v59 = vpop.f32.mrb[11].mxu0  ;;  %v1746_v40 = vadd.f32 %v3379_v36, %v1745_v58 }
 0x30e   : > { %v5450_v60 = vpop.f32.mrb[10].mxu1 }
 0x30f   : > { %v3647_v61 = vpop.f32.mrb[11].mxu1  ;;  %v1816_v44 = vadd.f32 %v3380_v41, %v5450_v60  ;;  %v3402_v41 = vld [vmem:[#allocation17] ss:$0 sm:$0xff] }
 0x3cd   : > { %v1896_v62 = vpop.f32.mrb[12].mxu0 }
 0x3ce   : > { %v3652_v63 = vpop.f32.mrb[13].mxu0  ;;  %v2128_v2 = vsel %vm1823_vm2, %v1896_v62, -inf }
 0x3cf   : > { %2129 = vmax.xlane.f32.xlu0 %v2128_v2 }
 0x3d1   : > { %v1972_v3 = vpop.f32.mrb[14].mxu0 }
 0x3d2   : > { %v3657_v4 = vpop.f32.mrb[15].mxu0  ;;  %v2131_v5 = vsel %vm1823_vm2, %v1972_v3, -inf }
 0x3d3   : > { %2132 = vmax.xlane.f32.xlu0 %v2131_v5 }
 0x3d5   : > { %v2048_v6 = vpop.f32.mrb[16].mxu0 }
 0x3d6   : > { %v2124_v7 = vpop.f32.mrb[12].mxu1  ;;  %v3662_v8 = vpop.f32.mrb[17].mxu0  ;;  %v2134_v9 = vsel %vm1823_vm2, %v2048_v6, -inf }
 0x3d7   : > { %v3667_v10 = vpop.f32.mrb[13].mxu1  ;;  %2135 = vmax.xlane.f32.xlu1 %v2134_v9  ;;  %v2137_v11 = vsel %vm1823_vm2, %v2124_v7, -inf }
 0x3db   : > { %2138 = vmax.xlane.f32.xlu1 %v2137_v11 }
 0x45c   : > { %v2130_v12 = vpop.xlane.xlu0 %2129 }
 0x45d   : > { %v2140_v13 = vsub.f32 %v1896_v62, %v2130_v12  ;;  %v3401_v12 = vld [vmem:[#allocation16] ss:$0 sm:$0xff] }
 0x45f   : > { %v2144_v14 = vmul.f32 1.442695, %v2140_v13 }
 0x460   : > { %v2133_v15 = vpop.xlane.xlu0 %2132 }
 0x461   : > { %4065 = vpow2.f32 %v2144_v14  ;;  %v2141_v16 = vsub.f32 %v1972_v3, %v2133_v15 }
 0x463   : > { %v2146_v17 = vmul.f32 1.442695, %v2141_v16 }
 0x464   : > { %v2136_v19 = vpop.xlane.xlu1 %2135 }
 0x465   : > { %4067 = vpow2.f32 %v2146_v17  ;;  %v2142_v20 = vsub.f32 %v2048_v6, %v2136_v19 }
 0x467   : > { %v2148_v21 = vmul.f32 1.442695, %v2142_v20 }
 0x468   : > { %v2139_v22 = vpop.xlane.xlu1 %2138 }
 0x469   : > { %4069 = vpow2.f32 %v2148_v21  ;;  %v2143_v23 = vsub.f32 %v2124_v7, %v2139_v22 }
 0x46b   : > { %v4066_v24 = vpop.eup %4065  ;;  %v2150_v25 = vmul.f32 1.442695, %v2143_v23  ;;  %v2810_v23 = vld [vmem:[#allocation20] sm:$0xff] }
 0x46c   : > { %v2152_v26 = vsel %vm1823_vm2, %v4066_v24, 0.0 }
 0x46d   : > { %4071 = vpow2.f32 %v2150_v25  ;;  %2153 = vadd.xlane.f32.xlu0 %v2152_v26  ;;  %v2812_v26 = vld [vmem:[#allocation20 + $0x10] sm:$0xff] }
 0x46f   : > { %v4068_v27 = vpop.eup %4067 }
 0x470   : > { %v2155_v28 = vsel %vm1823_vm2, %v4068_v27, 0.0 }
 0x471   : > { %2156 = vadd.xlane.f32.xlu1 %v2155_v28 }
 0x473   : > { %v4070_v29 = vpop.eup %4069 }
 0x474   : > { %v2158_v30 = vsel %vm1823_vm2, %v4070_v29, 0.0 }
 0x475   : > { %2159 = vadd.xlane.f32.xlu0 %v2158_v30  ;;  %v2897_v30 = vld [vmem:[#allocation23 + $0x10] sm:$0xff] }
 0x477   : > { %v4072_v31 = vpop.eup %4071 }
 0x478   : > { %v2161_v32 = vsel %vm1823_vm2, %v4072_v31, 0.0 }
 0x479   : > { %2162 = vadd.xlane.f32.xlu1 %v2161_v32  ;;  %v2898_v32 = vld [vmem:[#allocation23 + $0x18] sm:$0xff] }
 0x4fa   : > { %v2154_v33 = vpop.xlane.xlu0 %2153 }
 0x4fb   : > { %4073 = vrcp.f32 %v2154_v33  ;;  %v3820_v33 = vpack.c.bf16 %v2898_v32, %v2897_v30 }
 0x4fe   : > { %v2157_v34 = vpop.xlane.xlu1 %2156 }
 0x4ff   : > { %4075 = vrcp.f32 %v2157_v34  ;;  %v2899_v34 = vld [vmem:[#allocation23 + $0x20] sm:$0xff] }
 0x502   : > { %v2160_v35 = vpop.xlane.xlu0 %2159 }
 0x503   : > { %4077 = vrcp.f32 %v2160_v35  ;;  %v2900_v35 = vld [vmem:[#allocation23 + $0x28] sm:$0xff] }
 0x504   : > { %v3823_v36 = vpack.c.bf16 %v2900_v35, %v2899_v34 }
 0x505   : > { %v4074_v37 = vpop.eup %4073 }
 0x506   : > { %v2168_v38 = vmul.f32 %v4074_v37, %v4066_v24  ;;  %v2163_v39 = vpop.xlane.xlu1 %2162  ;;  %v2811_v24 = vld [vmem:[#allocation20 + $0x8] sm:$0xff] }
 0x507   : > { %4079 = vrcp.f32 %v2163_v39  ;;  %v3811_v25 = vpack.c.bf16 %v2811_v24, %v2810_v23 }
 0x508   : > { %2172 = vst.msk [vmem:[%s5461_s17] sm:$0xff] %vm1823_vm2, %v2168_v38  ;;  %3671 = vmatmul.mubr.msk.f32.vlgmr.msra.gmra.mrb[18].mxu0 %vm1823_vm2, %v2168_v38 }
 0x509   : > { %v4076_v42 = vpop.eup %4075  ;;  %3679 = vmatpush3.msra.mxu0 %v1746_v40  ;;  %3680 = vmatprep.mubr.msk.f32.mxu0 %vm4733_vm0, %v4734_v1 }
 0x50a   : > { %v2169_v43 = vmul.f32 %v4076_v42, %v4068_v27  ;;  %3688 = vmatprep.subr.mxu0 %v4734_v1  ;;  %v2813_v27 = vld [vmem:[#allocation20 + $0x18] sm:$0xff] }
 0x50b   : > { %v3814_v28 = vpack.c.bf16 %v2813_v27, %v2812_v26 }
 0x50c   : > { %2173 = vst.msk [vmem:[%s5461_s17 + $0x8] sm:$0xff] %vm1823_vm2, %v2169_v43  ;;  %3676 = vmatmul.mubr.msk.f32.vlgmr.msra.gmra.mrb[14].mxu1 %vm1823_vm2, %v2169_v43  ;;  %v3403_v43 = vld [vmem:[#allocation19] ss:$0 sm:$0xff] }
 0x50d   : > { %v4078_v45 = vpop.eup %4077  ;;  %3684 = vmatpush3.msra.mxu1 %v1816_v44  ;;  %3685 = vmatprep.mubr.msk.f32.mxu1 %vm4733_vm0, %v4734_v1 }
 0x50e   : > { %v2170_v46 = vmul.f32 %v4078_v45, %v4070_v29  ;;  %3693 = vmatprep.subr.mxu1 %v4734_v1  ;;  %v2896_v29 = vld [vmem:[#allocation23 + $0x8] sm:$0xff] }
 0x510   : > { %2174 = vst.msk [vmem:[%s5461_s17 + $0x10] sm:$0xff] %vm1823_vm2, %v2170_v46  ;;  %3681 = vmatmul.mubr.msk.f32.vlgmr.msra.gmra.mrb[20].mxu0 %vm1823_vm2, %v2170_v46  ;;  %v2901_v46 = vld [vmem:[#allocation23 + $0x30] sm:$0xff] }
 0x511   : > { %v4080_v47 = vpop.eup %4079  ;;  %3690 = vmatprep.mubr.msk.f32.mxu0 %vm4733_vm0, %v4734_v1  ;;  %3689 = vmatpush3.msra.mxu0 %v2468_v49  ;;  %v3404_v49 = vld [vmem:[#allocation22] ss:$0 sm:$0xff] }
 0x512   : > { %v2171_v48 = vmul.f32 %v4080_v47, %v4072_v31  ;;  %3698 = vmatprep.subr.mxu0 %v4734_v1  ;;  %v2902_v47 = vld [vmem:[#allocation23 + $0x38] sm:$0xff] }
 0x514   : > { %2175 = vst.msk [vmem:[%s5461_s17 + $0x18] sm:$0xff] %vm1823_vm2, %v2171_v48  ;;  %3686 = vmatmul.mubr.msk.f32.vlgmr.msra.gmra.mrb[16].mxu1 %vm1823_vm2, %v2171_v48  ;;  %v3826_v48 = vpack.c.bf16 %v2902_v47, %v2901_v46  ;;  %s4569_s17 = scalar_lea.vmem %s4568_s30, 1024 }
 0x515   : > { %3695 = vmatprep.mubr.msk.f32.mxu1 %vm4733_vm0, %v4734_v1  ;;  %3694 = vmatpush3.msra.mxu1 %v2469_v50  ;;  %p4571_p7 = scmp.lt.s32.totalorder %s4569_s17, %s4563_s4 }
 0x516   : > { %3703 = vmatprep.subr.mxu1 %v4734_v1 }
 0x517   : > { %p4572_p5 = por %p4571_p7, %p4570_p0 }
 0x519   : > { %p4573_p8 = pnand %p4572_p5, %p4566_p1 }
 0x5db   : > { %v2245_v52 = vpop.f32.mrb[18].mxu0 }
 0x5dc   : > { %v3672_v53 = vpop.f32.mrb[19].mxu0  ;;  %3691 = vmatmul.mubr.msk.f32.vlgmr.msra.gmra.mrb[22].mxu0 %vm1823_vm2, %v2245_v52 }
 0x5dd   : > { %3699 = vmatpush3.msra.mxu0 %v2470_v51  ;;  %3700 = vmatprep.mubr.msk.f32.mxu0 %vm4733_vm0, %v4734_v1  ;;  %v3406_v53 = vld [vmem:[#allocation25] ss:$0 sm:$0xff] }
 0x5de   : > { %3810 = vmatprep.subr.bf16.mxu0 %v4732_v0 }
 0x5df   : > { %v2318_v55 = vpop.f32.mrb[14].mxu1 }
 0x5e0   : > { %v3677_v56 = vpop.f32.mrb[15].mxu1  ;;  %3696 = vmatmul.mubr.msk.f32.vlgmr.msra.gmra.mrb[18].mxu1 %vm1823_vm2, %v2318_v55 }
 0x5e1   : > { %3704 = vmatpush3.msra.mxu1 %v2471_v54  ;;  %3705 = vmatprep.mubr.msk.f32.mxu1 %vm4733_vm0, %v4734_v1 }
 0x5e2   : > { %3816 = vmatprep.subr.bf16.mxu1 %v4732_v0 }
 0x5e3   : > { %v2391_v57 = vpop.f32.mrb[20].mxu0 }
 0x5e4   : > { %v3682_v58 = vpop.f32.mrb[21].mxu0  ;;  %3701 = vmatmul.mubr.msk.f32.vlgmr.msra.gmra.mrb[24].mxu0 %vm1823_vm2, %v2391_v57 }
 0x5e5   : > { %3716 = vmatprep.mubr.msk.f32.mxu0 %vm4733_vm0, %v4734_v1  ;;  %3812 = vmatpush3.bf16.msra.mxu0 %v3811_v25 }
 0x5e6   : > { %3813 = vmatprep.subr.bf16.mxu0 %v4732_v0 }
 0x5e7   : > { %v2464_v59 = vpop.f32.mrb[16].mxu1 }
 0x5e8   : > { %v3687_v60 = vpop.f32.mrb[17].mxu1  ;;  %3706 = vmatmul.mubr.msk.f32.vlgmr.msra.gmra.mrb[20].mxu1 %vm1823_vm2, %v2464_v59 }
 0x5e9   : > { %3735 = vmatprep.mubr.msk.f32.mxu1 %vm4733_vm0, %v4734_v1  ;;  %3815 = vmatpush3.bf16.msra.mxu0 %v3814_v28 }
 0x6af   : > { %v2541_v61 = vpop.f32.mrb[22].mxu0 }
 0x6b0   : > { %v3692_v62 = vpop.f32.mrb[23].mxu0  ;;  %v2764_v2 = vsel %vm884_vm1, %v2541_v61, 0.0 }
 0x6b3   : > { %v2614_v63 = vpop.f32.mrb[18].mxu1 }
 0x6b4   : > { %v2765_v3 = vsel %vm884_vm1, %v2614_v63, 0.0  ;;  %v3697_v4 = vpop.f32.mrb[19].mxu1 }
 0x6b5   : > { %v2766_v5 = vadd.f32 %v2765_v3, %v2764_v2 }
 0x6b7   : > { %v2687_v6 = vpop.f32.mrb[24].mxu0 }
 0x6b8   : > { %v2767_v7 = vsel %vm884_vm1, %v2687_v6, 0.0  ;;  %v3702_v8 = vpop.f32.mrb[25].mxu0 }
 0x6b9   : > { %v2768_v9 = vadd.f32 %v2767_v7, %v2766_v5 }
 0x6bb   : > { %v2760_v10 = vpop.f32.mrb[20].mxu1 }
 0x6bc   : > { %v2769_v11 = vsel %vm884_vm1, %v2760_v10, 0.0  ;;  %v3707_v13 = vpop.f32.mrb[21].mxu1 }
 0x6bd   : > { %v2770_v1 = vadd.f32 %v2769_v11, %v2768_v9 }
 0x6bf   : > { %v2778_v14 = vadd.f32 %v3401_v12, %v2770_v1 }
 0x6c1   : > { %v2779_v15 = vadd.f32 %v2778_v14, %v5356_v18  ;;  %v2895_v18 = vld [vmem:[#allocation23] sm:$0xff] }
 0x6c2   : > { %v3817_v31 = vpack.c.bf16 %v2896_v29, %v2895_v18 }
 0x6c3   : > { %v2780_v16 = vsel %vm884_vm1, %v2779_v15, 0.0 }
 0x6c4   : > { %2781 = vadd.xlane.f32.xlu0 %v2780_v16  ;;  %3818 = vmatpush3.bf16.msra.mxu1 %v3817_v31 }
 0x6c5   : > { %3819 = vmatprep.subr.bf16.mxu1 %v4732_v0 }
 0x6c8   : > { %3821 = vmatpush3.bf16.msra.mxu1 %v3820_v33 }
 0x6c9   : > { %3822 = vmatprep.subr.bf16.mxu1 %v4732_v0 }
 0x6cc   : > { %3824 = vmatpush3.bf16.msra.mxu1 %v3823_v36 }
 0x6cd   : > { %3825 = vmatprep.subr.bf16.mxu1 %v4732_v0 }
 0x6d0   : > { %3827 = vmatpush3.bf16.msra.mxu1 %v3826_v48 }
 0x751   : > { %v2782_v17 = vpop.xlane.xlu0 %2781 }
 0x752   : > { %v2784_v19 = vmul.f32 0.03125, %v2782_v17 }
 0x754   : > { %v2785_v20 = vsub.f32 %v2779_v15, %v2784_v19 }
 0x756   : > { %v2786_v21 = vmul.f32 %v2785_v20, %v2785_v20 }
 0x758   : > { %v2787_v22 = vsel %vm884_vm1, %v2786_v21, 0.0 }
 0x759   : > { %2788 = vadd.xlane.f32.xlu1 %v2787_v22 }
 0x7e6   : > { %v2789_v37 = vpop.xlane.xlu1 %2788 }
 0x7e7   : > { %v2790_v38 = vmul.f32 0.03125, %v2789_v37 }
 0x7e9   : > { %v2791_v39 = vadd.f32 1e-05, %v2790_v38 }
 0x7eb   : > { %4081 = vrsqrt.f32 %v2791_v39 }
 0x7f5   : > { %v4082_v40 = vpop.eup %4081 }
 0x7f6   : > { %v2793_v42 = vmul.f32 %v4082_v40, %v2785_v20 }
 0x7f8   : > { %v2801_v44 = vmul.f32 %v3402_v41, %v2793_v42 }
 0x7fa   : > { %v2809_v45 = vadd.f32 %v3403_v43, %v2801_v44 }
 0x7fc   : > { %3717 = vmatmul.mubr.msk.f32.vlgmr.msra.gmra.mrb[26].mxu0 %vm884_vm1, %v2809_v45 }
 0x8cf   : > { %v2890_v50 = vpop.f32.mrb[26].mxu0 }
 0x8d0   : > { %v2891_v51 = vadd.f32 %v3404_v49, %v2890_v50  ;;  %v3718_v0 = vpop.f32.mrb[27].mxu0 }
 0x8d2   : > { %v2894_v52 = vmax.f32 %v2891_v51, 0.0 }
 0x8d4   : > { %3736 = vmatmul.mubr.msk.f32.vlgmr.msra.gmra.mrb[22].mxu1 %vm2910_vm3, %v2894_v52 }
 0x9a7   : > { %v2980_v54 = vpop.f32.mrb[22].mxu1 }
 0x9a8   : > { %v2981_v55 = vadd.f32 %v3406_v53, %v2980_v54  ;;  %v3737_v56 = vpop.f32.mrb[23].mxu1 }
 0x9aa   : > { %v2984_v57 = vadd.f32 %v2981_v55, %v2809_v45 }
 0x9ac   : > { %v2985_v58 = vsel %vm884_vm1, %v2984_v57, 0.0 }
 0x9ad   : > { %2986 = vadd.xlane.f32.xlu0 %v2985_v58 }
 0xa3a   : > { %v2987_v59 = vpop.xlane.xlu0 %2986 }
 0xa3b   : > { %v2988_v60 = vmul.f32 0.03125, %v2987_v59 }
 0xa3d   : > { %v2989_v61 = vsub.f32 %v2984_v57, %v2988_v60 }
 0xa3f   : > { %v2990_v62 = vmul.f32 %v2989_v61, %v2989_v61 }
 0xa41   : > { %v2991_v63 = vsel %vm884_vm1, %v2990_v62, 0.0 }
 0xa42   : > { %2992 = vadd.xlane.f32.xlu1 %v2991_v63 }
 0xa43   : > { %4576 = shalt.err (!%p4573_p8)
}
 0xa44   : > { %s4577_s27 = scalar_lea.hbm %s5521_s20, 512  ;;  %s4581_s19 = scalar_lea.hbm %s5695_s21, 1024 }
 0xa45   : > { %p4578_p3 = scmp.ne.s32.totalorder %s5521_s20, %s4577_s27  ;;  %p4582_p13 = scmp.lt.u32.totalorder %s5521_s20, %s5695_s21 }
 0xa46   : > { %p4583_p12 = scmp.lt.u32.totalorder %s4581_s19, %s4577_s27  ;;  %p4585_p2 = scmp.lt.u32.totalorder %s4577_s27, %s5521_s20 }
 0xa47   : > { %p4579_p11 = pnand %p4578_p3, %p5696_p9 }
 0xa48   : > { %p4584_p4 = por %p4583_p12, %p4582_p13 }
 0xa49   : > { %p4580_p6 = pneg %p4579_p11 }
 0xa4a   : > { %p4586_p10 = por %p4585_p2, %p4584_p4 }
 0xa4c   : > { %p4587_p1 = pnand %p4586_p10, %p4580_p6 }
 0xa4e   : > { %4590 = shalt.err (!%p4587_p1)
}
 0xa4f   : > { %s4736_s4 = smov 128   ;;  %s4737_s17 = smov 8   ;;  %v3408_v6 = vld [vmem:[#allocation26] ss:$0 sm:$0xff]  ;;  %v3409_v8 = vld [vmem:[#allocation28] ss:$0 sm:$0xff] }
 0xa50   : > { %3895 = dma.vmem_to_hbm [thread:$0]  (%p5696_p9), %s5523_s5, 512, %s5521_s20, %s3021_s22, %s4736_s4, %s4736_s4, %s4737_s17  }
 0xa51   : > { %s3412_s27 = sshll.u32 %s5693_s23, 7  ;;  %s5697_s0 = sshll.u32 %s5303_s28, 3 }
 0xa52   : > { %s828_s2 = scalar_lea.vmem [#allocation29], %s5697_s0  ;;  %s5698_s6 = sld [smem:[#allocation59_spill]] }
 0xa53   : > { %s3035_s19 = sshll.u32 %s828_s2, 4  ;;  %s3016_s20 = scalar_lea.sflag [#allocation4], %s5303_s28  ;;  %s5557_s19 = int_to_ptr.vmem [resolvable:$true] %s3035_s19 }
 0xa54   : > { %s4591_s22 = scalar_lea.vmem %s5557_s19, 128  ;;  %s4738_s23 = smov [#allocation29]  }
 0xa55   : > { %p4592_p0 = scmp.ne.s32.totalorder %s5557_s19, %s4591_s22  ;;  %s4595_s4 = sshll.u32 %s4738_s23, 4  ;;  %s4596_s4 = int_to_ptr.vmem [resolvable:$false] %s4595_s4 }
 0xa56   : > { %s4597_s17 = scalar_lea.vmem %s4596_s4, 256  ;;  %p4598_p8 = scmp.lt.s32.totalorder %s5557_s19, %s4596_s4 }
 0xa57   : > { %p4593_p7 = pnand %p4592_p0, %p5696_p9  ;;  %p4599_p3 = scmp.lt.s32.totalorder %s4597_s17, %s4591_s22 }
 0xa58   : > { %s5555_s5 = scalar_lea.hbm %s5698_s6, %s3412_s27 }
 0xa59   : > { %p4594_p5 = pneg %p4593_p7  ;;  %p4600_p11 = por %p4599_p3, %p4598_p8 }
 0xa5b   : > { %p4601_p6 = pnand %p4600_p11, %p4594_p5 }
 0xacf   : > { %v2993_v2 = vpop.xlane.xlu1 %2992 }
 0xad0   : > { %v2994_v3 = vmul.f32 0.03125, %v2993_v2 }
 0xad2   : > { %v2995_v4 = vadd.f32 1e-05, %v2994_v3 }
 0xad4   : > { %4083 = vrsqrt.f32 %v2995_v4 }
 0xade   : > { %v4084_v5 = vpop.eup %4083 }
 0xadf   : > { %v2997_v7 = vmul.f32 %v4084_v5, %v2989_v61 }
 0xae1   : > { %v3005_v9 = vmul.f32 %v3408_v6, %v2997_v7 }
 0xae3   : > { %v3013_v10 = vadd.f32 %v3409_v8, %v3005_v9 }
 0xae5   : > { %3014 = vst.msk [vmem:[%s828_s2] sm:$0xff] %vm884_vm1, %v3013_v10 }
 0xae6   : > { %4604 = shalt.err (!%p4601_p6)
}
 0xae7   : > { %s4605_s28 = scalar_lea.hbm %s5555_s5, 128  ;;  %s4609_s2 = scalar_lea.hbm %s5698_s6, 256 }
 0xae8   : > { %p4606_p13 = scmp.ne.s32.totalorder %s5555_s5, %s4605_s28  ;;  %p4610_p2 = scmp.lt.u32.totalorder %s5555_s5, %s5698_s6 }
 0xae9   : > { %p4611_p10 = scmp.lt.u32.totalorder %s4609_s2, %s4605_s28  ;;  %p4613_p0 = scmp.lt.u32.totalorder %s4605_s28, %s5555_s5 }
 0xaea   : > { %p4607_p12 = pnand %p4606_p13, %p5696_p9 }
 0xaeb   : > { %p4612_p1 = por %p4611_p10, %p4610_p2 }
 0xaec   : > { %p4608_p4 = pneg %p4607_p12 }
 0xaed   : > { %p4614_p7 = por %p4613_p0, %p4612_p1 }
 0xaef   : > { %p4615_p5 = pnand %p4614_p7, %p4608_p4 }
 0xaf1   : > { %4618 = shalt.err (!%p4615_p5)
}
 0xaf2   : > { %3894 = dma.vmem_to_hbm [thread:$0]  (%p5696_p9), %s5557_s19, 128, %s5555_s5, %s3016_s20  }
 0xaf3 PF: > { %s5699_s22 = sld [smem:[#allocation43_spill]]  ;;  %s5700_s23 = sld [smem:[#allocation48_spill]] }
 0xaf4   : > { %p5701_p8 = scmp.ne.s32.totalorder %s5685_s7, 0 }
 0xaf9   : > { %s3064_s4 = sand.u32 1, %s5699_s22   ;;  %p5702_p3 = scmp.ge.s32.totalorder %s5700_s23, 2 }
 0xafa   : > { %s3065_s17 = scalar_lea.sflag [#allocation4], %s3064_s4 }
 0xafb   : > { %p3952_p11 = pnand %p5702_p3, %p5701_p8 }
 0xafd   : > { %4680 = dma.done.wait (!%p3952_p11), %s3065_s17, 128  }
 0xafe   : > { %4682 = vsyncadd (!%p3952_p11), %s3065_s17, 4294967168  ;;  %s3074_s28 = scalar_lea.sflag [#allocation31], %s3064_s4 }
 0xaff   : > { %4684 = dma.done.wait (!%p3952_p11), %s3074_s28, 512  }
 0xb00   : > { %4686 = vsyncadd (!%p3952_p11), %s3074_s28, 4294966784  ;;  %s46_s19 = sadd.s32 1, %s5700_s23   ;;  %s5703_s27 = sld [smem:[#allocation44_spill]] }
 0xb01   : > { %p43_p6 = scmp.ge.s32.totalorder %s46_s19, 4   ;;  %s5704_s28 = sld [smem:[#allocation45_spill]] }
 0xb02   : > { %s5705_s30 = sld [smem:[#allocation47_spill]]  ;;  %s5706_s29 = smov %s5253_s3 }
 0xb03   : > { %s5707_s0 = smov %s5709_s1  ;;  %45 = sbr.rel (!%p43_p6) target bundleno = 27 (0x1b), region = 215 }
 0xb0a   :  { %3079 = vsyncpa [#allocation3], 1 }
 0xb0b   :  { %3081 = vsyncpa [#allocation3 + $0x1], 1 }
 0xb0c   :  { %3082 = vsyncpa [#allocation6], 1 }
 0xb0d   :  { %3083 = vsyncpa [#allocation9], 1 }
 0xb0e   :  { %3084 = vsyncpa [#allocation12], 1 }
 0xb0f   :  { %3085 = vsyncpa [#allocation15], 1 }
 0xb10   :  { %3086 = vsyncpa [#allocation18], 1 }
 0xb11   :  { %3087 = vsyncpa [#allocation21], 1 }
 0xb12   :  { %3088 = vsyncpa [#allocation24], 1 }
 0xb13   :  { %3089 = vsyncpa [#allocation27], 1 }
 0xb14   :  { %3090 = vsyncpa [#allocation4], 1 }
 0xb15   :  { %3092 = vsyncpa [#allocation4 + $0x1], 1 }
 0xb16   :  { %3093 = vsyncpa [#allocation31], 1 }
 0xb17   :  { %3095 = vsyncpa [#allocation31 + $0x1], 1 }

</bundles_post_ra>
